<compile_context>
chip_gen: v5e
topology: v5e:2x2
jax: 0.10.0
libtpu: 0.0.40
codegen_flags: <defaults>
</compile_context>

<pallas_src>
import jax
import jax.numpy as jnp
from jax.experimental import pallas as pl
from jax.experimental.pallas import tpu as pltpu


# Vocab sizes from the PyTorch module __init__
VOCAB_SIZES = (2024, 3, 5, 13, 32, 100, 600, 200, 6, 8)
NUM_FIELDS = len(VOCAB_SIZES)
_LANE = 128


def _round_up(x, m):
    return (x + m - 1) // m * m


# Per-field 128-aligned band widths / offsets into the concatenated table.
PADDED_SIZES = tuple(_round_up(v, _LANE) for v in VOCAB_SIZES)
PADDED_OFFSETS = tuple(sum(PADDED_SIZES[:k]) for k in range(NUM_FIELDS))
V_PAD = sum(PADDED_SIZES)  # 3840


def _temporal_embed_kernel(idx_ref, w_ref, out_ref, mh_ref):
    # idx_ref: [TILE_N, NUM_FIELDS] int32  (raw per-field indices, no offsets)
    # w_ref:   [V_PAD, D]           bf16   (per-field padded, concatenated tables)
    # out_ref: [TILE_N, D]          f32
    # mh_ref:  [TILE_N, V_PAD]      bf16 scratch; every band is overwritten each
    #          grid step, so it never needs zero-init.
    idx = idx_ref[...]
    tile_n = idx.shape[0]

    for k in range(NUM_FIELDS):
        off = PADDED_OFFSETS[k]
        width = PADDED_SIZES[k]
        iota_k = jax.lax.broadcasted_iota(jnp.int32, (tile_n, width), 1)
        mh_ref[:, off:off + width] = (
            iota_k == idx[:, k:k + 1]).astype(mh_ref.dtype)

    out_ref[...] = jnp.dot(mh_ref[...], w_ref[...],
                           preferred_element_type=jnp.float32)


def prepare_temporal_embedding_table(tables, dtype=jnp.bfloat16):
    """Hoisted param prep (call once at model init): pad each field's table to a
    multiple of 128 rows, cast to bf16, and concatenate row-wise -> [V_PAD, D]."""
    d_model = tables[0].shape[1]
    padded = []
    for k, tbl in enumerate(tables):
        assert tbl.shape == (VOCAB_SIZES[k], d_model)
        pad_rows = PADDED_SIZES[k] - VOCAB_SIZES[k]
        padded.append(jnp.pad(tbl.astype(dtype), ((0, pad_rows), (0, 0))))
    return jnp.concatenate(padded, axis=0)


def temporal_embedding_forward(x_idx, w_concat, *, tile_n=512):
    """x_idx: [B, S, 10] integer indices; w_concat: [V_PAD, D] prepared table."""
    b, s, nf = x_idx.shape
    assert nf == NUM_FIELDS
    v_pad, d_model = w_concat.shape
    assert v_pad == V_PAD

    n = b * s
    # Clamp the tile for tiny inputs; keep it a multiple of 16 (bf16 sublane pack).
    tile_n = min(tile_n, _round_up(n, 16))
    tile_n = _round_up(tile_n, 16)
    n_pad = _round_up(n, tile_n)

    idx = x_idx.astype(jnp.int32).reshape(n, NUM_FIELDS)
    if n_pad != n:
        idx = jnp.pad(idx, ((0, n_pad - n), (0, 0)))  # tail rows sliced off below

    grid = (n_pad // tile_n,)

    out = pl.pallas_call(
        _temporal_embed_kernel,
        out_shape=jax.ShapeDtypeStruct((n_pad, d_model), jnp.float32),
        grid_spec=pltpu.PrefetchScalarGridSpec(
            num_scalar_prefetch=0,
            grid=grid,
            in_specs=[
                # per-tile indices (10 lanes; tiny, lane padding accepted)
                pl.BlockSpec((tile_n, NUM_FIELDS), lambda i: (i, 0)),
                # full table, constant block -> stays resident across the grid
                pl.BlockSpec((V_PAD, d_model), lambda i: (0, 0)),
            ],
            out_specs=pl.BlockSpec((tile_n, d_model), lambda i: (i, 0)),
            scratch_shapes=[pltpu.VMEM((tile_n, V_PAD), w_concat.dtype)],
        ),
        compiler_params=pltpu.CompilerParams(
            dimension_semantics=("parallel",),
            vmem_limit_bytes=32 * 1024 * 1024,
        ),
    )(idx, w_concat)

    return out[:n].reshape(b, s, d_model)


def _reference_forward(x_idx, tables):
    """Pure-JAX reference matching the PyTorch forward (f32 accumulation)."""
    acc = None
    for k, tbl in enumerate(tables):
        e = jnp.take(tbl, x_idx[:, :, k], axis=0).astype(jnp.float32)
        acc = e if acc is None else acc + e
    return acc


def _make_inputs(key, b, s, d_model):
    keys = jax.random.split(key, NUM_FIELDS + 1)
    tables = [
        jax.random.normal(keys[k], (VOCAB_SIZES[k], d_model), dtype=jnp.float32)
        for k in range(NUM_FIELDS)
    ]
    idx_key = keys[-1]
    cols = []
    for v in VOCAB_SIZES:
        idx_key, sub = jax.random.split(idx_key)
        cols.append(jax.random.randint(sub, (b, s, 1), 0, v, dtype=jnp.int32))
    x = jnp.concatenate(cols, axis=-1)  # [B, S, 10] int32
    return x, tables


def _check(b, s, d_model, key):
    x, tables = _make_inputs(key, b, s, d_model)

    # Hoisted once-per-model prep (bf16 concatenated/padded table).
    w_concat = prepare_temporal_embedding_table(tables, dtype=jnp.bfloat16)

    out = temporal_embedding_forward(x, w_concat)
    out = jax.block_until_ready(out)
    assert out.shape == (b, s, d_model)

    # Tight check vs the same bf16 weights the kernel consumed.
    tables_bf16 = [t.astype(jnp.bfloat16) for t in tables]
    ref_bf16 = _reference_forward(x, tables_bf16)
    assert jnp.allclose(out, ref_bf16, atol=1e-4, rtol=1e-4), "mismatch vs bf16 ref"

    # Loose check vs the exact f32 PyTorch-equivalent reference
    # (difference is only the bf16 rounding of the weights).
    ref_f32 = _reference_forward(x, tables)
    assert jnp.allclose(out, ref_f32, atol=2e-1, rtol=1e-1), "mismatch vs f32 ref"


if __name__ == "__main__":
    D_MODEL = 32
    key = jax.random.PRNGKey(0)
    k1, k2 = jax.random.split(key)

    # Small shape from the spec (single grid step).
    _check(b=2, s=8, d_model=D_MODEL, key=k1)

    # Slightly larger shape to exercise the multi-tile parallel grid
    # (N = 1024, TILE_N = 512 -> grid of 2).
    _check(b=4, s=256, d_model=D_MODEL, key=k2)

    print("KERNEL_OK")
</pallas_src>

<mosaic_0001>
module attributes {stable_mosaic.version = 11 : i64} {
  func.func @_temporal_embed_kernel(%arg0: i32, %arg1: memref<16x10xi32, #tpu.memory_space<vmem>>, %arg2: memref<3840x32xbf16, #tpu.memory_space<vmem>>, %arg3: memref<16x32xf32, #tpu.memory_space<vmem>>, %arg4: memref<16x3840xbf16, #tpu.memory_space<vmem>>) attributes {dimension_semantics = [#tpu.dimension_semantics<parallel>], iteration_bounds = array<i64: 1>, scalar_prefetch = 0 : i64, scratch_operands = 1 : i64, tpu.core_type = #tpu.core_type<tc>, window_params = [{transform_indices = @transform_0, window_bounds = array<i64: 16, 10>}, {pipeline_mode = #tpu.pipeline_mode<synchronous>, transform_indices = @transform_1, window_bounds = array<i64: 3840, 32>}, {transform_indices = @transform_2, window_bounds = array<i64: 16, 32>}]} {
    %c0 = arith.constant 0 : index
    %c0_0 = arith.constant 0 : index
    %0 = vector.load %arg1[%c0, %c0_0] : memref<16x10xi32, #tpu.memory_space<vmem>>, vector<16x10xi32>
    %1 = tpu.iota {dimensions = array<i32: 1>} : vector<16x2048xi32>
    %2 = vector.extract_strided_slice %0 {offsets = [0, 0], sizes = [16, 1], strides = [1, 1]} : vector<16x10xi32> to vector<16x1xi32>
    %3 = vector.broadcast %2 : vector<16x1xi32> to vector<16x2048xi32>
    %4 = arith.cmpi eq, %1, %3 : vector<16x2048xi32>
    %5 = arith.extui %4 : vector<16x2048xi1> to vector<16x2048xi32>
    %6 = arith.sitofp %5 : vector<16x2048xi32> to vector<16x2048xf32>
    %7 = arith.truncf %6 : vector<16x2048xf32> to vector<16x2048xbf16>
    %c0_1 = arith.constant 0 : index
    %c0_2 = arith.constant 0 : index
    %8 = vector.load %arg4[%c0_1, %c0_2] : memref<16x3840xbf16, #tpu.memory_space<vmem>>, vector<16x2048xbf16>
    tpu.vector_store %arg4[%c0_1, %c0_2], %7 {strides = array<i32>} : memref<16x3840xbf16, #tpu.memory_space<vmem>>, vector<16x2048xbf16>,
    %9 = tpu.iota {dimensions = array<i32: 1>} : vector<16x128xi32>
    %10 = vector.extract_strided_slice %0 {offsets = [0, 1], sizes = [16, 1], strides = [1, 1]} : vector<16x10xi32> to vector<16x1xi32>
    %11 = vector.broadcast %10 : vector<16x1xi32> to vector<16x128xi32>
    %12 = arith.cmpi eq, %9, %11 : vector<16x128xi32>
    %13 = arith.extui %12 : vector<16x128xi1> to vector<16x128xi32>
    %14 = arith.sitofp %13 : vector<16x128xi32> to vector<16x128xf32>
    %15 = arith.truncf %14 : vector<16x128xf32> to vector<16x128xbf16>
    %c0_3 = arith.constant 0 : index
    %c2048 = arith.constant 2048 : index
    %16 = vector.load %arg4[%c0_3, %c2048] : memref<16x3840xbf16, #tpu.memory_space<vmem>>, vector<16x128xbf16>
    tpu.vector_store %arg4[%c0_3, %c2048], %15 {strides = array<i32>} : memref<16x3840xbf16, #tpu.memory_space<vmem>>, vector<16x128xbf16>,
    %17 = tpu.iota {dimensions = array<i32: 1>} : vector<16x128xi32>
    %18 = vector.extract_strided_slice %0 {offsets = [0, 2], sizes = [16, 1], strides = [1, 1]} : vector<16x10xi32> to vector<16x1xi32>
    %19 = vector.broadcast %18 : vector<16x1xi32> to vector<16x128xi32>
    %20 = arith.cmpi eq, %17, %19 : vector<16x128xi32>
    %21 = arith.extui %20 : vector<16x128xi1> to vector<16x128xi32>
    %22 = arith.sitofp %21 : vector<16x128xi32> to vector<16x128xf32>
    %23 = arith.truncf %22 : vector<16x128xf32> to vector<16x128xbf16>
    %c0_4 = arith.constant 0 : index
    %c2176 = arith.constant 2176 : index
    %24 = vector.load %arg4[%c0_4, %c2176] : memref<16x3840xbf16, #tpu.memory_space<vmem>>, vector<16x128xbf16>
    tpu.vector_store %arg4[%c0_4, %c2176], %23 {strides = array<i32>} : memref<16x3840xbf16, #tpu.memory_space<vmem>>, vector<16x128xbf16>,
    %25 = tpu.iota {dimensions = array<i32: 1>} : vector<16x128xi32>
    %26 = vector.extract_strided_slice %0 {offsets = [0, 3], sizes = [16, 1], strides = [1, 1]} : vector<16x10xi32> to vector<16x1xi32>
    %27 = vector.broadcast %26 : vector<16x1xi32> to vector<16x128xi32>
    %28 = arith.cmpi eq, %25, %27 : vector<16x128xi32>
    %29 = arith.extui %28 : vector<16x128xi1> to vector<16x128xi32>
    %30 = arith.sitofp %29 : vector<16x128xi32> to vector<16x128xf32>
    %31 = arith.truncf %30 : vector<16x128xf32> to vector<16x128xbf16>
    %c0_5 = arith.constant 0 : index
    %c2304 = arith.constant 2304 : index
    %32 = vector.load %arg4[%c0_5, %c2304] : memref<16x3840xbf16, #tpu.memory_space<vmem>>, vector<16x128xbf16>
    tpu.vector_store %arg4[%c0_5, %c2304], %31 {strides = array<i32>} : memref<16x3840xbf16, #tpu.memory_space<vmem>>, vector<16x128xbf16>,
    %33 = tpu.iota {dimensions = array<i32: 1>} : vector<16x128xi32>
    %34 = vector.extract_strided_slice %0 {offsets = [0, 4], sizes = [16, 1], strides = [1, 1]} : vector<16x10xi32> to vector<16x1xi32>
    %35 = vector.broadcast %34 : vector<16x1xi32> to vector<16x128xi32>
    %36 = arith.cmpi eq, %33, %35 : vector<16x128xi32>
    %37 = arith.extui %36 : vector<16x128xi1> to vector<16x128xi32>
    %38 = arith.sitofp %37 : vector<16x128xi32> to vector<16x128xf32>
    %39 = arith.truncf %38 : vector<16x128xf32> to vector<16x128xbf16>
    %c0_6 = arith.constant 0 : index
    %c2432 = arith.constant 2432 : index
    %40 = vector.load %arg4[%c0_6, %c2432] : memref<16x3840xbf16, #tpu.memory_space<vmem>>, vector<16x128xbf16>
    tpu.vector_store %arg4[%c0_6, %c2432], %39 {strides = array<i32>} : memref<16x3840xbf16, #tpu.memory_space<vmem>>, vector<16x128xbf16>,
    %41 = tpu.iota {dimensions = array<i32: 1>} : vector<16x128xi32>
    %42 = vector.extract_strided_slice %0 {offsets = [0, 5], sizes = [16, 1], strides = [1, 1]} : vector<16x10xi32> to vector<16x1xi32>
    %43 = vector.broadcast %42 : vector<16x1xi32> to vector<16x128xi32>
    %44 = arith.cmpi eq, %41, %43 : vector<16x128xi32>
    %45 = arith.extui %44 : vector<16x128xi1> to vector<16x128xi32>
    %46 = arith.sitofp %45 : vector<16x128xi32> to vector<16x128xf32>
    %47 = arith.truncf %46 : vector<16x128xf32> to vector<16x128xbf16>
    %c0_7 = arith.constant 0 : index
    %c2560 = arith.constant 2560 : index
    %48 = vector.load %arg4[%c0_7, %c2560] : memref<16x3840xbf16, #tpu.memory_space<vmem>>, vector<16x128xbf16>
    tpu.vector_store %arg4[%c0_7, %c2560], %47 {strides = array<i32>} : memref<16x3840xbf16, #tpu.memory_space<vmem>>, vector<16x128xbf16>,
    %49 = tpu.iota {dimensions = array<i32: 1>} : vector<16x640xi32>
    %50 = vector.extract_strided_slice %0 {offsets = [0, 6], sizes = [16, 1], strides = [1, 1]} : vector<16x10xi32> to vector<16x1xi32>
    %51 = vector.broadcast %50 : vector<16x1xi32> to vector<16x640xi32>
    %52 = arith.cmpi eq, %49, %51 : vector<16x640xi32>
    %53 = arith.extui %52 : vector<16x640xi1> to vector<16x640xi32>
    %54 = arith.sitofp %53 : vector<16x640xi32> to vector<16x640xf32>
    %55 = arith.truncf %54 : vector<16x640xf32> to vector<16x640xbf16>
    %c0_8 = arith.constant 0 : index
    %c2688 = arith.constant 2688 : index
    %56 = vector.load %arg4[%c0_8, %c2688] : memref<16x3840xbf16, #tpu.memory_space<vmem>>, vector<16x640xbf16>
    tpu.vector_store %arg4[%c0_8, %c2688], %55 {strides = array<i32>} : memref<16x3840xbf16, #tpu.memory_space<vmem>>, vector<16x640xbf16>,
    %57 = tpu.iota {dimensions = array<i32: 1>} : vector<16x256xi32>
    %58 = vector.extract_strided_slice %0 {offsets = [0, 7], sizes = [16, 1], strides = [1, 1]} : vector<16x10xi32> to vector<16x1xi32>
    %59 = vector.broadcast %58 : vector<16x1xi32> to vector<16x256xi32>
    %60 = arith.cmpi eq, %57, %59 : vector<16x256xi32>
    %61 = arith.extui %60 : vector<16x256xi1> to vector<16x256xi32>
    %62 = arith.sitofp %61 : vector<16x256xi32> to vector<16x256xf32>
    %63 = arith.truncf %62 : vector<16x256xf32> to vector<16x256xbf16>
    %c0_9 = arith.constant 0 : index
    %c3328 = arith.constant 3328 : index
    %64 = vector.load %arg4[%c0_9, %c3328] : memref<16x3840xbf16, #tpu.memory_space<vmem>>, vector<16x256xbf16>
    tpu.vector_store %arg4[%c0_9, %c3328], %63 {strides = array<i32>} : memref<16x3840xbf16, #tpu.memory_space<vmem>>, vector<16x256xbf16>,
    %65 = tpu.iota {dimensions = array<i32: 1>} : vector<16x128xi32>
    %66 = vector.extract_strided_slice %0 {offsets = [0, 8], sizes = [16, 1], strides = [1, 1]} : vector<16x10xi32> to vector<16x1xi32>
    %67 = vector.broadcast %66 : vector<16x1xi32> to vector<16x128xi32>
    %68 = arith.cmpi eq, %65, %67 : vector<16x128xi32>
    %69 = arith.extui %68 : vector<16x128xi1> to vector<16x128xi32>
    %70 = arith.sitofp %69 : vector<16x128xi32> to vector<16x128xf32>
    %71 = arith.truncf %70 : vector<16x128xf32> to vector<16x128xbf16>
    %c0_10 = arith.constant 0 : index
    %c3584 = arith.constant 3584 : index
    %72 = vector.load %arg4[%c0_10, %c3584] : memref<16x3840xbf16, #tpu.memory_space<vmem>>, vector<16x128xbf16>
    tpu.vector_store %arg4[%c0_10, %c3584], %71 {strides = array<i32>} : memref<16x3840xbf16, #tpu.memory_space<vmem>>, vector<16x128xbf16>,
    %73 = tpu.iota {dimensions = array<i32: 1>} : vector<16x128xi32>
    %74 = vector.extract_strided_slice %0 {offsets = [0, 9], sizes = [16, 1], strides = [1, 1]} : vector<16x10xi32> to vector<16x1xi32>
    %75 = vector.broadcast %74 : vector<16x1xi32> to vector<16x128xi32>
    %76 = arith.cmpi eq, %73, %75 : vector<16x128xi32>
    %77 = arith.extui %76 : vector<16x128xi1> to vector<16x128xi32>
    %78 = arith.sitofp %77 : vector<16x128xi32> to vector<16x128xf32>
    %79 = arith.truncf %78 : vector<16x128xf32> to vector<16x128xbf16>
    %c0_11 = arith.constant 0 : index
    %c3712 = arith.constant 3712 : index
    %80 = vector.load %arg4[%c0_11, %c3712] : memref<16x3840xbf16, #tpu.memory_space<vmem>>, vector<16x128xbf16>
    tpu.vector_store %arg4[%c0_11, %c3712], %79 {strides = array<i32>} : memref<16x3840xbf16, #tpu.memory_space<vmem>>, vector<16x128xbf16>,
    %c0_12 = arith.constant 0 : index
    %c0_13 = arith.constant 0 : index
    %81 = vector.load %arg4[%c0_12, %c0_13] : memref<16x3840xbf16, #tpu.memory_space<vmem>>, vector<16x3840xbf16>
    %c0_14 = arith.constant 0 : index
    %c0_15 = arith.constant 0 : index
    %82 = vector.load %arg2[%c0_14, %c0_15] : memref<3840x32xbf16, #tpu.memory_space<vmem>>, vector<3840x32xbf16>
    %cst = arith.constant dense<0.000000e+00> : vector<16x32xf32>
    %83 = tpu.matmul %81, %82, %cst {dimension_numbers = #tpu.dot_dimension_numbers<[1], [0], [0], [1], [0, 0, 1, 1], [], []>} : vector<16x3840xbf16>, vector<3840x32xbf16>, vector<16x32xf32> -> vector<16x32xf32>
    %c0_16 = arith.constant 0 : index
    %c0_17 = arith.constant 0 : index
    %84 = vector.load %arg3[%c0_16, %c0_17] : memref<16x32xf32, #tpu.memory_space<vmem>>, vector<16x32xf32>
    tpu.vector_store %arg3[%c0_16, %c0_17], %83 {strides = array<i32>} : memref<16x32xf32, #tpu.memory_space<vmem>>, vector<16x32xf32>,
    return
  }
  func.func @transform_0(%arg0: i32) -> (i32, i32) {
    %c0_i32 = arith.constant 0 : i32
    %c0_i32_0 = arith.constant 0 : i32
    return %arg0, %c0_i32 : i32, i32
  }
  func.func @transform_1(%arg0: i32) -> (i32, i32) {
    %c0_i32 = arith.constant 0 : i32
    %c0_i32_0 = arith.constant 0 : i32
    %c0_i32_1 = arith.constant 0 : i32
    return %c0_i32, %c0_i32_0 : i32, i32
  }
  func.func @transform_2(%arg0: i32) -> (i32, i32) {
    %c0_i32 = arith.constant 0 : i32
    %c0_i32_0 = arith.constant 0 : i32
    return %arg0, %c0_i32 : i32, i32
  }
}

</mosaic_0001>

<bundles_post_ra>
// kernel: tpu_custom_call.1
= control target key start
LH: loop header
LB: loop body
LE: loop exit
PB: predicated region body
PF: predicated region fallthrough
CT: control target
= control target key end

     0   :  { %v4356_v2 = vmov 0   ;;  %v4357_v3 = vmov 1   ;;  %v4358_v11 = vmov 2   ;;  %s5362_s0 = inlined_call_operand.vmem [shape: s32[16,10], index: 0, kind: input, shape index: {}]   ;;  %s5363_s1 = inlined_call_operand.vmem [shape: bf16[3840,32], index: 1, kind: input, shape index: {}]   ;;  %s5364_s2 = inlined_call_operand.hbm [shape: f32[16,32], index: 2, kind: output, shape index: {}]  }
   0x1   :  { %v4388_v0 = vld [vmem:[%s5362_s0] sm:$0xff]  ;;  %v4065_v1 = vld [vmem:[%s5363_s1 + $0x38] sm:$0xff]  ;;  %4312 = vset.pattern.permute.xlu0 %v4356_v2  ;;  %4313 = vset.pattern.permute.xlu1 %v4357_v3  ;;  %v4064_v7 = vld [vmem:[%s5363_s1 + $0x30] sm:$0xff] }
   0x2   :  { %v4073_v4 = vld [vmem:[%s5363_s1 + $0x78] sm:$0xff]  ;;  %32 = vperm.xlu0 %4312, %v4388_v0   ;;  %166 = vperm.xlu1 %4313, %v4388_v0   ;;  %v4072_v8 = vld [vmem:[%s5363_s1 + $0x70] sm:$0xff]  ;;  %v4420_v12 = vld [vmem:[%s5362_s0 + $0x8] sm:$0xff] }
   0x3   :  { %v4081_v5 = vld [vmem:[%s5363_s1 + $0xb8] sm:$0xff]  ;;  %2447 = vmatpush.bf16.msra.mxu0 %v4065_v1  ;;  %2461 = vmatpush.bf16.msra.mxu1 %v4073_v4  ;;  %v4080_v9 = vld [vmem:[%s5363_s1 + $0xb0] sm:$0xff]  ;;  %v4063_v13 = vld [vmem:[%s5363_s1 + $0x28] sm:$0xff] }
   0x4   :  { %v4089_v6 = vld [vmem:[%s5363_s1 + $0xf8] sm:$0xff]  ;;  %2475 = vmatpush.bf16.msra.mxu2 %v4081_v5  ;;  %v4088_v10 = vld [vmem:[%s5363_s1 + $0xf0] sm:$0xff]  ;;  %4314 = vset.pattern.permute.xlu2 %v4358_v11  ;;  %v4071_v14 = vld [vmem:[%s5363_s1 + $0x68] sm:$0xff] }
   0x5   :  { %2489 = vmatpush.bf16.msra.mxu3 %v4089_v6  ;;  %182 = vperm.xlu2 %4314, %v4388_v0   ;;  %v4079_v15 = vld [vmem:[%s5363_s1 + $0xa8] sm:$0xff]  ;;  %v4062_v17 = vld [vmem:[%s5363_s1 + $0x20] sm:$0xff] }
   0x6   :  { %v4087_v16 = vld [vmem:[%s5363_s1 + $0xe8] sm:$0xff]  ;;  %v4070_v18 = vld [vmem:[%s5363_s1 + $0x60] sm:$0xff] }
   0x7   :  { %2448 = vmatpush.bf16.msra.mxu0 %v4064_v7  ;;  %2462 = vmatpush.bf16.msra.mxu1 %v4072_v8  ;;  %v4078_v19 = vld [vmem:[%s5363_s1 + $0xa0] sm:$0xff] }
   0x8   :  { %2476 = vmatpush.bf16.msra.mxu2 %v4080_v9  ;;  %v4086_v20 = vld [vmem:[%s5363_s1 + $0xe0] sm:$0xff] }
   0x9   :  { %2490 = vmatpush.bf16.msra.mxu3 %v4088_v10 }
   0xa   :  { %35 = vperm.xlu0 %4312, %v4420_v12   ;;  %169 = vperm.xlu1 %4313, %v4420_v12  }
   0xb   :  { %2449 = vmatpush.bf16.msra.mxu0 %v4063_v13  ;;  %2463 = vmatpush.bf16.msra.mxu1 %v4071_v14 }
   0xc   :  { %2477 = vmatpush.bf16.msra.mxu2 %v4079_v15 }
   0xd   :  { %2491 = vmatpush.bf16.msra.mxu3 %v4087_v16  ;;  %185 = vperm.xlu2 %4314, %v4420_v12  }
   0xe   :  { %7 = vsyncpa [#allocation4], 0  ;;  %v4061_v21 = vld [vmem:[%s5363_s1 + $0x18] sm:$0xff]  ;;  %v4359_v25 = vmov 3   ;;  %v4060_v26 = vld [vmem:[%s5363_s1 + $0x10] sm:$0xff]  ;;  %v4360_v30 = vmov 4   ;;  %v14_v10 = vlaneseq }
   0xf   :  { %2450 = vmatpush.bf16.msra.mxu0 %v4062_v17  ;;  %2464 = vmatpush.bf16.msra.mxu1 %v4070_v18  ;;  %v4069_v22 = vld [vmem:[%s5363_s1 + $0x58] sm:$0xff]  ;;  %v4068_v27 = vld [vmem:[%s5363_s1 + $0x50] sm:$0xff]  ;;  %v4059_v31 = vld [vmem:[%s5363_s1 + $0x8] sm:$0xff]  ;;  %v4361_v59 = vmov 6   ;;  %v4362_v60 = vmov 5   ;;  %s2876_s4 = sshll.u32 %s5364_s2, 4  ;;  %s2877_s4 = int_to_ptr.hbm [resolvable:$true] %s2876_s4 }
  0x10   :  { %2478 = vmatpush.bf16.msra.mxu2 %v4078_v19  ;;  %v4077_v23 = vld [vmem:[%s5363_s1 + $0x98] sm:$0xff]  ;;  %v4076_v28 = vld [vmem:[%s5363_s1 + $0x90] sm:$0xff]  ;;  %v4067_v32 = vld [vmem:[%s5363_s1 + $0x48] sm:$0xff]  ;;  %v4600_v11 = vand.u32 127, %v14_v10  ;;  %s4368_s5 = smov 128   ;;  %s4369_s6 = smov 8  }
  0x11   :  { %2492 = vmatpush.bf16.msra.mxu3 %v4086_v20  ;;  %v4085_v24 = vld [vmem:[%s5363_s1 + $0xd8] sm:$0xff]  ;;  %v4084_v29 = vld [vmem:[%s5363_s1 + $0xd0] sm:$0xff]  ;;  %v4075_v33 = vld [vmem:[%s5363_s1 + $0x88] sm:$0xff] }
  0x12   :  { %4316 = vset.pattern.permute.xlu1 %v4359_v25  ;;  %4315 = vset.pattern.permute.xlu0 %v4359_v25  ;;  %v4083_v34 = vld [vmem:[%s5363_s1 + $0xc8] sm:$0xff]  ;;  %v4058_v35 = vld [vmem:[%s5363_s1] sm:$0xff]  ;;  %v4097_v37 = vld [vmem:[%s5363_s1 + $0x138] sm:$0xff]  ;;  %v4604_v13 = vadd.s32 128, %v4600_v11  ;;  %v4607_v14 = vadd.s32 256, %v4600_v11  ;;  %v4610_v15 = vadd.s32 384, %v4600_v11 }
  0x13   :  { %201 = vperm.xlu1 %4316, %v4420_v12   ;;  %2451 = vmatpush.bf16.msra.mxu0 %v4061_v21  ;;  %v4066_v36 = vld [vmem:[%s5363_s1 + $0x40] sm:$0xff]  ;;  %v4105_v40 = vld [vmem:[%s5363_s1 + $0x178] sm:$0xff]  ;;  %v4096_v43 = vld [vmem:[%s5363_s1 + $0x130] sm:$0xff]  ;;  %v4613_v16 = vadd.s32 512, %v4600_v11  ;;  %v4616_v17 = vadd.s32 640, %v4600_v11  ;;  %v4619_v18 = vadd.s32 768, %v4600_v11 }
  0x14   :  { %2465 = vmatpush.bf16.msra.mxu1 %v4069_v22  ;;  %2479 = vmatpush.bf16.msra.mxu2 %v4077_v23  ;;  %v4074_v38 = vld [vmem:[%s5363_s1 + $0x80] sm:$0xff]  ;;  %v4113_v41 = vld [vmem:[%s5363_s1 + $0x1b8] sm:$0xff]  ;;  %v4104_v44 = vld [vmem:[%s5363_s1 + $0x170] sm:$0xff]  ;;  %v4622_v19 = vadd.s32 896, %v4600_v11  ;;  %v4625_v20 = vadd.s32 1024, %v4600_v11  ;;  %v4628_v21 = vadd.s32 1152, %v4600_v11 }
  0x15   :  { %2493 = vmatpush.bf16.msra.mxu3 %v4085_v24  ;;  %198 = vperm.xlu0 %4315, %v4388_v0   ;;  %v4082_v39 = vld [vmem:[%s5363_s1 + $0xc0] sm:$0xff]  ;;  %v4121_v42 = vld [vmem:[%s5363_s1 + $0x1f8] sm:$0xff]  ;;  %v4112_v45 = vld [vmem:[%s5363_s1 + $0x1b0] sm:$0xff]  ;;  %v4631_v22 = vadd.s32 1280, %v4600_v11  ;;  %v4634_v23 = vadd.s32 1408, %v4600_v11  ;;  %v4639_v25 = vadd.s32 1536, %v4600_v11 }
  0x16   :  { %4317 = vset.pattern.permute.xlu2 %v4360_v30  ;;  %v4120_v46 = vld [vmem:[%s5363_s1 + $0x1f0] sm:$0xff]  ;;  %v4095_v47 = vld [vmem:[%s5363_s1 + $0x128] sm:$0xff]  ;;  %v4094_v51 = vld [vmem:[%s5363_s1 + $0x120] sm:$0xff] }
  0x17   :  { %2452 = vmatpush.bf16.msra.mxu0 %v4060_v26  ;;  %214 = vperm.xlu2 %4317, %v4388_v0   ;;  %v4103_v48 = vld [vmem:[%s5363_s1 + $0x168] sm:$0xff]  ;;  %v4102_v52 = vld [vmem:[%s5363_s1 + $0x160] sm:$0xff]  ;;  %v4093_v55 = vld [vmem:[%s5363_s1 + $0x118] sm:$0xff]  ;;  %v4642_v26 = vadd.s32 1664, %v4600_v11 }
  0x18   :  { %2466 = vmatpush.bf16.msra.mxu1 %v4068_v27  ;;  %2480 = vmatpush.bf16.msra.mxu2 %v4076_v28  ;;  %v4111_v49 = vld [vmem:[%s5363_s1 + $0x1a8] sm:$0xff]  ;;  %v4110_v53 = vld [vmem:[%s5363_s1 + $0x1a0] sm:$0xff]  ;;  %v4101_v56 = vld [vmem:[%s5363_s1 + $0x158] sm:$0xff]  ;;  %v4645_v27 = vadd.s32 1792, %v4600_v11  ;;  %v4648_v28 = vadd.s32 1920, %v4600_v11 }
  0x19   :  { %2494 = vmatpush.bf16.msra.mxu3 %v4084_v29  ;;  %v4119_v50 = vld [vmem:[%s5363_s1 + $0x1e8] sm:$0xff]  ;;  %v4118_v54 = vld [vmem:[%s5363_s1 + $0x1e0] sm:$0xff]  ;;  %v4109_v57 = vld [vmem:[%s5363_s1 + $0x198] sm:$0xff]  ;;  %v4363_v29 = vmov 0.0  }
  0x1a   :  { %v4117_v58 = vld [vmem:[%s5363_s1 + $0x1d8] sm:$0xff]  ;;  %v4092_v61 = vld [vmem:[%s5363_s1 + $0x110] sm:$0xff]  ;;  %v4091_v2 = vld [vmem:[%s5363_s1 + $0x108] sm:$0xff] }
  0x1b   :  { %4318 = vset.pattern.permute.xlu1 %v4360_v30  ;;  %2453 = vmatpush.bf16.msra.mxu0 %v4059_v31  ;;  %v4100_v62 = vld [vmem:[%s5363_s1 + $0x150] sm:$0xff]  ;;  %v4099_v3 = vld [vmem:[%s5363_s1 + $0x148] sm:$0xff]  ;;  %v4090_v6 = vld [vmem:[%s5363_s1 + $0x100] sm:$0xff] }
  0x1c   :  { %217 = vperm.xlu1 %4318, %v4420_v12   ;;  %2467 = vmatpush.bf16.msra.mxu1 %v4067_v32  ;;  %v4108_v63 = vld [vmem:[%s5363_s1 + $0x190] sm:$0xff]  ;;  %v4107_v4 = vld [vmem:[%s5363_s1 + $0x188] sm:$0xff]  ;;  %v4098_v7 = vld [vmem:[%s5363_s1 + $0x140] sm:$0xff] }
  0x1d   :  { %2481 = vmatpush.bf16.msra.mxu2 %v4075_v33  ;;  %2495 = vmatpush.bf16.msra.mxu3 %v4083_v34  ;;  %v4116_v1 = vld [vmem:[%s5363_s1 + $0x1d0] sm:$0xff]  ;;  %v4115_v5 = vld [vmem:[%s5363_s1 + $0x1c8] sm:$0xff]  ;;  %v4106_v8 = vld [vmem:[%s5363_s1 + $0x180] sm:$0xff] }
  0x1e   :  { %4320 = vset.pattern.permute.xlu0 %v4362_v60  ;;  %v4114_v9 = vld [vmem:[%s5363_s1 + $0x1c0] sm:$0xff] }
  0x1f   :  { %2454 = vmatpush.bf16.msra.mxu0 %v4058_v35  ;;  %233 = vperm.xlu0 %4320, %v4420_v12  }
  0x20   :  { %2468 = vmatpush.bf16.msra.mxu1 %v4066_v36  ;;  %4319 = vset.pattern.permute.xlu2 %v4362_v60 }
  0x21   :  { %2482 = vmatpush.bf16.msra.mxu2 %v4074_v38  ;;  %2496 = vmatpush.bf16.msra.mxu3 %v4082_v39 }
  0x22   :  { %230 = vperm.xlu2 %4319, %v4388_v0  }
  0x23   :  { %2503 = vmatpush.bf16.msrb.mxu0 %v4097_v37 }
  0x24   :  { %2517 = vmatpush.bf16.msrb.mxu1 %v4105_v40  ;;  %4321 = vset.pattern.permute.xlu1 %v4361_v59 }
  0x25   :  { %2531 = vmatpush.bf16.msrb.mxu2 %v4113_v41  ;;  %2545 = vmatpush.bf16.msrb.mxu3 %v4121_v42 }
  0x26   :  { %246 = vperm.xlu1 %4321, %v4388_v0  }
  0x27   :  { %2504 = vmatpush.bf16.msrb.mxu0 %v4096_v43 }
  0x28   :  { %2518 = vmatpush.bf16.msrb.mxu1 %v4104_v44 }
  0x29   :  { %2532 = vmatpush.bf16.msrb.mxu2 %v4112_v45  ;;  %2546 = vmatpush.bf16.msrb.mxu3 %v4120_v46 }
  0x2a   :  { %4322 = vset.pattern.permute.xlu2 %v4361_v59 }
  0x2b   :  { %2505 = vmatpush.bf16.msrb.mxu0 %v4095_v47  ;;  %249 = vperm.xlu2 %4322, %v4420_v12  }
  0x2c   :  { %2519 = vmatpush.bf16.msrb.mxu1 %v4103_v48 }
  0x2d   :  { %2533 = vmatpush.bf16.msrb.mxu2 %v4111_v49  ;;  %2547 = vmatpush.bf16.msrb.mxu3 %v4119_v50 }
  0x2f   :  { %2506 = vmatpush.bf16.msrb.mxu0 %v4094_v51 }
  0x30   :  { %2520 = vmatpush.bf16.msrb.mxu1 %v4102_v52 }
  0x31   :  { %2534 = vmatpush.bf16.msrb.mxu2 %v4110_v53  ;;  %2548 = vmatpush.bf16.msrb.mxu3 %v4118_v54 }
  0x33   :  { %2507 = vmatpush.bf16.msrb.mxu0 %v4093_v55 }
  0x34   :  { %2521 = vmatpush.bf16.msrb.mxu1 %v4101_v56 }
  0x35   :  { %2535 = vmatpush.bf16.msrb.mxu2 %v4109_v57  ;;  %2549 = vmatpush.bf16.msrb.mxu3 %v4117_v58 }
  0x37   :  { %2508 = vmatpush.bf16.msrb.mxu0 %v4092_v61 }
  0x38   :  { %2522 = vmatpush.bf16.msrb.mxu1 %v4100_v62  ;;  %v4364_v62 = vmov 7  }
  0x39   :  { %2536 = vmatpush.bf16.msrb.mxu2 %v4108_v63  ;;  %2550 = vmatpush.bf16.msrb.mxu3 %v4116_v1 }
  0x3a   :  { %4323 = vset.pattern.permute.xlu1 %v4364_v62  ;;  %4324 = vset.pattern.permute.xlu2 %v4364_v62 }
  0x3b   :  { %2509 = vmatpush.bf16.msrb.mxu0 %v4091_v2  ;;  %294 = vperm.xlu1 %4323, %v4388_v0  }
  0x3c   :  { %2523 = vmatpush.bf16.msrb.mxu1 %v4099_v3  ;;  %297 = vperm.xlu2 %4324, %v4420_v12  }
  0x3d   :  { %2537 = vmatpush.bf16.msrb.mxu2 %v4107_v4  ;;  %2551 = vmatpush.bf16.msrb.mxu3 %v4115_v5 }
  0x3f   :  { %2510 = vmatpush.bf16.msrb.mxu0 %v4090_v6 }
  0x40   :  { %2524 = vmatpush.bf16.msrb.mxu1 %v4098_v7 }
  0x41   :  { %2538 = vmatpush.bf16.msrb.mxu2 %v4106_v8  ;;  %2552 = vmatpush.bf16.msrb.mxu3 %v4114_v9 }
  0x74   :  { %v4636_v24 = vpop.permute.xlu0 %32 }
  0x75   :  { %vm37_vm0 = vcmp.eq.s32.totalorder %v4600_v11, %v4636_v24  ;;  %vm38_vm1 = vcmp.eq.s32.totalorder %v4604_v13, %v4636_v24  ;;  %vm39_vm2 = vcmp.eq.s32.totalorder %v4607_v14, %v4636_v24  ;;  %vm40_vm3 = vcmp.eq.s32.totalorder %v4610_v15, %v4636_v24 }
  0x76   :  { %v2888_v30 = vsel %vm37_vm0, 1.0, %v4363_v29  ;;  %v2889_v31 = vsel %vm38_vm1, 1.0, %v4363_v29  ;;  %v2890_v32 = vsel %vm39_vm2, 1.0, %v4363_v29  ;;  %v2891_v33 = vsel %vm40_vm3, 1.0, %v4363_v29 }
  0x77   :  { %v133_v34 = vpack.c.bf16 %v2889_v31, %v2888_v30  ;;  %v134_v35 = vpack.c.bf16 %v2891_v33, %v2890_v32  ;;  %vm41_vm4 = vcmp.eq.s32.totalorder %v4613_v16, %v4636_v24  ;;  %vm42_vm5 = vcmp.eq.s32.totalorder %v4616_v17, %v4636_v24  ;;  %v4137_v30 = vld [vmem:[%s5363_s1 + $0x278] sm:$0xff] }
  0x78   :  { %v2892_v36 = vsel %vm41_vm4, 1.0, %v4363_v29  ;;  %v2893_v37 = vsel %vm42_vm5, 1.0, %v4363_v29  ;;  %vm43_vm6 = vcmp.eq.s32.totalorder %v4619_v18, %v4636_v24  ;;  %vm44_vm7 = vcmp.eq.s32.totalorder %v4622_v19, %v4636_v24 }
  0x79   :  { %149 = vst [vmem:[#allocation2] sm:$0xff] %v133_v34  ;;  %v135_v38 = vpack.c.bf16 %v2893_v37, %v2892_v36  ;;  %v2894_v39 = vsel %vm43_vm6, 1.0, %v4363_v29  ;;  %v2895_v40 = vsel %vm44_vm7, 1.0, %v4363_v29  ;;  %vm45_vm8 = vcmp.eq.s32.totalorder %v4625_v20, %v4636_v24 }
  0x7a   :  { %150 = vst [vmem:[#allocation2 + $0x8] sm:$0xff] %v134_v35  ;;  %v136_v41 = vpack.c.bf16 %v2895_v40, %v2894_v39  ;;  %vm46_vm9 = vcmp.eq.s32.totalorder %v4628_v21, %v4636_v24  ;;  %v2896_v42 = vsel %vm45_vm8, 1.0, %v4363_v29  ;;  %vm47_vm10 = vcmp.eq.s32.totalorder %v4631_v22, %v4636_v24  ;;  %v4128_v40 = vld [vmem:[%s5363_s1 + $0x230] sm:$0xff] }
  0x7b   :  { %151 = vst [vmem:[#allocation2 + $0x10] sm:$0xff] %v135_v38  ;;  %v2897_v43 = vsel %vm46_vm9, 1.0, %v4363_v29  ;;  %vm48_vm11 = vcmp.eq.s32.totalorder %v4634_v23, %v4636_v24  ;;  %v2898_v44 = vsel %vm47_vm10, 1.0, %v4363_v29  ;;  %vm49_vm12 = vcmp.eq.s32.totalorder %v4639_v25, %v4636_v24  ;;  %v4145_v38 = vld [vmem:[%s5363_s1 + $0x2b8] sm:$0xff] }
  0x7c   :  { %v4687_v45 = vpop.permute.xlu0 %35  ;;  %152 = vst [vmem:[#allocation2 + $0x18] sm:$0xff] %v136_v41  ;;  %v137_v46 = vpack.c.bf16 %v2897_v43, %v2896_v42  ;;  %v2899_v47 = vsel %vm48_vm11, 1.0, %v4363_v29  ;;  %vm50_vm13 = vcmp.eq.s32.totalorder %v4642_v26, %v4636_v24  ;;  %v4693_v48 = vsel %vm49_vm12, 1.0, %v4363_v29  ;;  %v4136_v41 = vld [vmem:[%s5363_s1 + $0x270] sm:$0xff] }
  0x7d   :  { %vm53_vm14 = vcmp.eq.s32.totalorder %v4600_v11, %v4687_v45  ;;  %vm54_vm15 = vcmp.eq.s32.totalorder %v4604_v13, %v4687_v45  ;;  %vm55_vm0 = vcmp.eq.s32.totalorder %v4607_v14, %v4687_v45  ;;  %vm56_vm1 = vcmp.eq.s32.totalorder %v4610_v15, %v4687_v45  ;;  %v4144_v42 = vld [vmem:[%s5363_s1 + $0x2b0] sm:$0xff] }
  0x7e   :  { %v2904_v49 = vsel %vm53_vm14, 1.0, %v4363_v29  ;;  %v2905_v50 = vsel %vm54_vm15, 1.0, %v4363_v29  ;;  %v2906_v51 = vsel %vm55_vm0, 1.0, %v4363_v29  ;;  %v2907_v52 = vsel %vm56_vm1, 1.0, %v4363_v29  ;;  %153 = vst [vmem:[#allocation2 + $0x20] sm:$0xff] %v137_v46  ;;  %v4152_v43 = vld [vmem:[%s5363_s1 + $0x2f0] sm:$0xff] }
  0x7f   :  { %v141_v53 = vpack.c.bf16 %v2905_v50, %v2904_v49  ;;  %v142_v54 = vpack.c.bf16 %v2907_v52, %v2906_v51  ;;  %vm57_vm2 = vcmp.eq.s32.totalorder %v4613_v16, %v4687_v45  ;;  %vm58_vm3 = vcmp.eq.s32.totalorder %v4616_v17, %v4687_v45  ;;  %v4143_v46 = vld [vmem:[%s5363_s1 + $0x2a8] sm:$0xff]  ;;  %v4126_v49 = vld [vmem:[%s5363_s1 + $0x220] sm:$0xff] }
  0x80   :  { %v2908_v55 = vsel %vm57_vm2, 1.0, %v4363_v29  ;;  %v2909_v56 = vsel %vm58_vm3, 1.0, %v4363_v29  ;;  %vm59_vm4 = vcmp.eq.s32.totalorder %v4619_v18, %v4687_v45  ;;  %vm60_vm5 = vcmp.eq.s32.totalorder %v4622_v19, %v4687_v45  ;;  %v2950_v6 = vld [vmem:[#allocation2] sm:$0xf]  ;;  %v4028_v7 = vld [vmem:[#allocation2 + $0x4] sm:$0xf] }
  0x81   :  { %157 = vst [vmem:[#allocation2 + $0x78] sm:$0xff] %v141_v53  ;;  %v143_v57 = vpack.c.bf16 %v2909_v56, %v2908_v55  ;;  %v2910_v58 = vsel %vm59_vm4, 1.0, %v4363_v29  ;;  %vm61_vm6 = vcmp.eq.s32.totalorder %v4625_v20, %v4687_v45  ;;  %vm62_vm7 = vcmp.eq.s32.totalorder %v4628_v21, %v4687_v45  ;;  %v2958_v17 = vld [vmem:[#allocation2 + $0x8] sm:$0xf]  ;;  %v4029_v18 = vld [vmem:[#allocation2 + $0xc] sm:$0xf] }
  0x82   :  { %158 = vst [vmem:[#allocation2 + $0x80] sm:$0xff] %v142_v54  ;;  %v2911_v59 = vsel %vm60_vm5, 1.0, %v4363_v29  ;;  %vm63_vm8 = vcmp.eq.s32.totalorder %v4631_v22, %v4687_v45  ;;  %vm64_vm9 = vcmp.eq.s32.totalorder %v4634_v23, %v4687_v45  ;;  %v138_v60 = vpack.c.bf16 %v2899_v47, %v2898_v44  ;;  %v4129_v19 = vld [vmem:[%s5363_s1 + $0x238] sm:$0xff]  ;;  %v4127_v44 = vld [vmem:[%s5363_s1 + $0x228] sm:$0xff]  ;;  %v4134_v50 = vld [vmem:[%s5363_s1 + $0x260] sm:$0xff] }
  0x83   :  { %159 = vst [vmem:[#allocation2 + $0x88] sm:$0xff] %v143_v57  ;;  %v144_v61 = vpack.c.bf16 %v2911_v59, %v2910_v58  ;;  %vm65_vm10 = vcmp.eq.s32.totalorder %v4639_v25, %v4687_v45  ;;  %vm66_vm11 = vcmp.eq.s32.totalorder %v4642_v26, %v4687_v45  ;;  %v2912_v63 = vsel %vm61_vm6, 1.0, %v4363_v29  ;;  %v4151_v47 = vld [vmem:[%s5363_s1 + $0x2e8] sm:$0xff]  ;;  %v4142_v51 = vld [vmem:[%s5363_s1 + $0x2a0] sm:$0xff]  ;;  %v2966_v57 = vld [vmem:[#allocation2 + $0x10] sm:$0xf] }
  0x84   :  { %v2913_v1 = vsel %vm62_vm7, 1.0, %v4363_v29  ;;  %v2914_v2 = vsel %vm63_vm8, 1.0, %v4363_v29  ;;  %vm51_vm12 = vcmp.eq.s32.totalorder %v4645_v27, %v4636_v24  ;;  %v2915_v4 = vsel %vm64_vm9, 1.0, %v4363_v29  ;;  %154 = vst [vmem:[#allocation2 + $0x28] sm:$0xff] %v138_v60  ;;  %v4150_v52 = vld [vmem:[%s5363_s1 + $0x2e0] sm:$0xff]  ;;  %v4125_v59 = vld [vmem:[%s5363_s1 + $0x218] sm:$0xff] }
  0x85   :  { %160 = vst [vmem:[#allocation2 + $0x90] sm:$0xff] %v144_v61  ;;  %v145_v3 = vpack.c.bf16 %v2913_v1, %v2912_v63  ;;  %v2901_v5 = vsel %vm50_vm13, 1.0, %v4363_v29  ;;  %vm52_vm14 = vcmp.eq.s32.totalorder %v4648_v28, %v4636_v24  ;;  %v146_v8 = vpack.c.bf16 %v2915_v4, %v2914_v2  ;;  %v4030_v58 = vld [vmem:[#allocation2 + $0x14] sm:$0xf]  ;;  %v2974_v62 = vld [vmem:[#allocation2 + $0x18] sm:$0xf] }
  0x86   :  { %v2916_v9 = vsel %vm65_vm10, 1.0, %v4363_v29  ;;  %v139_v10 = vpack.c.bf16 %v2901_v5, %v4693_v48  ;;  %vm67_vm15 = vcmp.eq.s32.totalorder %v4645_v27, %v4687_v45  ;;  %v2917_v20 = vsel %vm66_vm11, 1.0, %v4363_v29  ;;  %v4031_v63 = vld [vmem:[#allocation2 + $0x1c] sm:$0xf] }
  0x87   :  { %161 = vst [vmem:[#allocation2 + $0x98] sm:$0xff] %v145_v3  ;;  %v2902_v21 = vsel %vm51_vm12, 1.0, %v4363_v29  ;;  %v2903_v22 = vsel %vm52_vm14, 1.0, %v4363_v29  ;;  %v147_v31 = vpack.c.bf16 %v2917_v20, %v2916_v9  ;;  %vm68_vm13 = vcmp.eq.s32.totalorder %v4648_v28, %v4687_v45  ;;  %v4153_v28 = vld [vmem:[%s5363_s1 + $0x2f8] sm:$0xff]  ;;  %v4135_v45 = vld [vmem:[%s5363_s1 + $0x268] sm:$0xff]  ;;  %v4148_v9 = vld [vmem:[%s5363_s1 + $0x2d0] sm:$0xff] }
  0x88   :  { %v4043_v23 = vld [vmem:[#allocation2 + $0x74] sm:$0xf0]  ;;  %v2952_v25 = vld [vmem:[#allocation2 + $0x78] sm:$0xf0]  ;;  %162 = vst [vmem:[#allocation2 + $0xa0] sm:$0xff] %v146_v8  ;;  %v140_v26 = vpack.c.bf16 %v2903_v22, %v2902_v21  ;;  %v2918_v24 = vsel %vm67_vm15, 1.0, %v4363_v29 }
  0x89   :  { %v2951_v32 = vor.u32 %v4043_v23, %v2950_v6  ;;  %v2955_v33 = vor.u32 %v4028_v7, %v2952_v25  ;;  %v4044_v34 = vld [vmem:[#allocation2 + $0x7c] sm:$0xf0]  ;;  %v2960_v35 = vld [vmem:[#allocation2 + $0x80] sm:$0xf0]  ;;  %155 = vst [vmem:[#allocation2 + $0x30] sm:$0xff] %v139_v10  ;;  %v2919_v39 = vsel %vm68_vm13, 1.0, %v4363_v29 }
  0x8a   :  { %v2959_v36 = vor.u32 %v4044_v34, %v2958_v17  ;;  %v2963_v37 = vor.u32 %v4029_v18, %v2960_v35  ;;  %163 = vst [vmem:[#allocation2 + $0xa8] sm:$0xff] %v147_v31  ;;  %v148_v27 = vpack.c.bf16 %v2919_v39, %v2918_v24  ;;  %v4365_v48 = vmov 8   ;;  %v4045_v53 = vld [vmem:[#allocation2 + $0x84] sm:$0xf0]  ;;  %v2968_v54 = vld [vmem:[#allocation2 + $0x88] sm:$0xf0]  ;;  %v167_v17 = vpop.permute.xlu1 %166 }
  0x8b   :  { %2455 = vmatmul.bf16.vlgmr.msra.gmra.mxu0 %v2951_v32  ;;  %2469 = vmatmul.bf16.vlgmr.msra.gmra.mxu1 %v2955_v33  ;;  %156 = vst [vmem:[#allocation2 + $0x38] sm:$0xff] %v140_v26  ;;  %v2967_v60 = vor.u32 %v4045_v53, %v2966_v57  ;;  %v2971_v61 = vor.u32 %v4030_v58, %v2968_v54  ;;  %v4133_v1 = vld [vmem:[%s5363_s1 + $0x258] sm:$0xff]  ;;  %v4124_v6 = vld [vmem:[%s5363_s1 + $0x210] sm:$0xff]  ;;  %v4366_v10 = vmov 9   ;;  %v4123_v18 = vld [vmem:[%s5363_s1 + $0x208] sm:$0xff] }
  0x8c   :  { %2483 = vmatmul.bf16.vlgmr.msra.gmra.mxu2 %v2959_v36  ;;  %2497 = vmatmul.bf16.vlgmr.msra.gmra.mxu3 %v2963_v37  ;;  %164 = vst [vmem:[#allocation2 + $0xb0] sm:$0xff] %v148_v27  ;;  %v4046_v55 = vld [vmem:[#allocation2 + $0x8c] sm:$0xf0]  ;;  %v2976_v56 = vld [vmem:[#allocation2 + $0x90] sm:$0xf0]  ;;  %v4141_v4 = vld [vmem:[%s5363_s1 + $0x298] sm:$0xff]  ;;  %vm171_vm0 = vcmp.eq.s32.totalorder %v4600_v11, %v167_v17  ;;  %v183_v27 = vpop.permute.xlu2 %182 }
  0x8d   :  { %2559 = vmatpush.bf16.msra.mxu0 %v4129_v19  ;;  %2573 = vmatpush.bf16.msra.mxu1 %v4137_v30  ;;  %v2975_v2 = vor.u32 %v4046_v55, %v2974_v62  ;;  %v2979_v3 = vor.u32 %v4031_v63, %v2976_v56  ;;  %v4149_v5 = vld [vmem:[%s5363_s1 + $0x2d8] sm:$0xff]  ;;  %v4132_v7 = vld [vmem:[%s5363_s1 + $0x250] sm:$0xff]  ;;  %v4131_v19 = vld [vmem:[%s5363_s1 + $0x248] sm:$0xff]  ;;  %v2920_v20 = vsel %vm171_vm0, 1.0, %v4363_v29  ;;  %vm187_vm1 = vcmp.eq.s32.totalorder %v4600_v11, %v183_v27 }
  0x8e   :  { %2587 = vmatpush.bf16.msra.mxu2 %v4145_v38  ;;  %2601 = vmatpush.bf16.msra.mxu3 %v4153_v28  ;;  %v4140_v8 = vld [vmem:[%s5363_s1 + $0x290] sm:$0xff]  ;;  %v177_v21 = vpack.c.bf16 %v2920_v20, %v2920_v20  ;;  %v4122_v22 = vld [vmem:[%s5363_s1 + $0x200] sm:$0xff]  ;;  %v4161_v31 = vld [vmem:[%s5363_s1 + $0x338] sm:$0xff] }
  0x8f   :  { %4326 = vset.pattern.permute.xlu1 %v4365_v48  ;;  %4325 = vset.pattern.permute.xlu0 %v4365_v48  ;;  %v4130_v23 = vld [vmem:[%s5363_s1 + $0x240] sm:$0xff]  ;;  %v4169_v26 = vld [vmem:[%s5363_s1 + $0x378] sm:$0xff]  ;;  %v2990_v39 = vld [vmem:[#allocation2 + $0x28] sm:$0xf] }
  0x90   :  { %319 = vperm.xlu1 %4326, %v4420_v12   ;;  %316 = vperm.xlu0 %4325, %v4388_v0   ;;  %179 = vst [vmem:[#allocation2 + $0x40] sm:$0xf] %v177_v21  ;;  %v4138_v25 = vld [vmem:[%s5363_s1 + $0x280] sm:$0xff]  ;;  %v4047_v32 = vld [vmem:[#allocation2 + $0x94] sm:$0xf0]  ;;  %v4184_v48 = vld [vmem:[%s5363_s1 + $0x3f0] sm:$0xff] }
  0x91   :  { %2560 = vmatpush.bf16.msra.mxu0 %v4128_v40  ;;  %2574 = vmatpush.bf16.msra.mxu1 %v4136_v41  ;;  %v4146_v30 = vld [vmem:[%s5363_s1 + $0x2c0] sm:$0xff]  ;;  %v4177_v33 = vld [vmem:[%s5363_s1 + $0x3b8] sm:$0xff]  ;;  %v4159_v53 = vld [vmem:[%s5363_s1 + $0x328] sm:$0xff] }
  0x92   :  { %2588 = vmatpush.bf16.msra.mxu2 %v4144_v42  ;;  %2602 = vmatpush.bf16.msra.mxu3 %v4152_v43  ;;  %v4185_v34 = vld [vmem:[%s5363_s1 + $0x3f8] sm:$0xff]  ;;  %v2982_v24 = vld [vmem:[#allocation2 + $0x20] sm:$0xf]  ;;  %v2992_v37 = vld [vmem:[#allocation2 + $0xa0] sm:$0xf0]  ;;  %v170_v40 = vpop.permute.xlu1 %169 }
  0x93   :  { %4327 = vset.pattern.permute.xlu2 %v4366_v10  ;;  %v2984_v35 = vld [vmem:[#allocation2 + $0x98] sm:$0xf0]  ;;  %v4048_v36 = vld [vmem:[#allocation2 + $0x9c] sm:$0xf0]  ;;  %v2983_v38 = vor.u32 %v4047_v32, %v2982_v24  ;;  %v4032_v28 = vld [vmem:[#allocation2 + $0x24] sm:$0xf]  ;;  %vm172_vm2 = vcmp.eq.s32.totalorder %v4600_v11, %v170_v40 }
  0x94   :  { %332 = vperm.xlu2 %4327, %v4388_v0   ;;  %v4147_v0 = vld [vmem:[%s5363_s1 + $0x2c8] sm:$0xff]  ;;  %v2987_v41 = vor.u32 %v4032_v28, %v2984_v35  ;;  %v4160_v43 = vld [vmem:[%s5363_s1 + $0x330] sm:$0xff]  ;;  %v186_v57 = vpop.permute.xlu2 %185  ;;  %v4182_v62 = vld [vmem:[%s5363_s1 + $0x3e0] sm:$0xff] }
  0x95   :  { %2561 = vmatpush.bf16.msra.mxu0 %v4127_v44  ;;  %2575 = vmatpush.bf16.msra.mxu1 %v4135_v45  ;;  %v4033_v42 = vld [vmem:[#allocation2 + $0x2c] sm:$0xf]  ;;  %v4168_v44 = vld [vmem:[%s5363_s1 + $0x370] sm:$0xff]  ;;  %v2991_v45 = vor.u32 %v4048_v36, %v2990_v39  ;;  %vm188_vm3 = vcmp.eq.s32.totalorder %v4600_v11, %v186_v57  ;;  %v4170_v35 = vld [vmem:[%s5363_s1 + $0x380] sm:$0xff] }
  0x96   :  { %2589 = vmatpush.bf16.msra.mxu2 %v4143_v46  ;;  %2603 = vmatpush.bf16.msra.mxu3 %v4151_v47  ;;  %v2995_v46 = vor.u32 %v4033_v42, %v2992_v37  ;;  %v4176_v47 = vld [vmem:[%s5363_s1 + $0x3b0] sm:$0xff]  ;;  %v4167_v54 = vld [vmem:[%s5363_s1 + $0x368] sm:$0xff]  ;;  %v2923_v63 = vsel %vm188_vm3, 1.0, %v4363_v29  ;;  %v4178_v24 = vld [vmem:[%s5363_s1 + $0x3c0] sm:$0xff] }
  0x97   :  { %v4175_v55 = vld [vmem:[%s5363_s1 + $0x3a8] sm:$0xff]  ;;  %v4164_v17 = vld [vmem:[%s5363_s1 + $0x350] sm:$0xff]  ;;  %v4193_v36 = vld [vmem:[%s5363_s1 + $0x438] sm:$0xff] }
  0x98   :  { %4328 = vset.pattern.permute.xlu1 %v4366_v10  ;;  %4329 = vset.pattern.permute.xlu0 %v4366_v10  ;;  %v4183_v56 = vld [vmem:[%s5363_s1 + $0x3e8] sm:$0xff]  ;;  %v4156_v10 = vld [vmem:[%s5363_s1 + $0x310] sm:$0xff]  ;;  %v4201_v37 = vld [vmem:[%s5363_s1 + $0x478] sm:$0xff] }
  0x99   :  { %2562 = vmatpush.bf16.msra.mxu0 %v4126_v49  ;;  %2576 = vmatpush.bf16.msra.mxu1 %v4134_v50  ;;  %v2922_v49 = vsel %vm187_vm1, 1.0, %v4363_v29  ;;  %v2921_v50 = vsel %vm172_vm2, 1.0, %v4363_v29  ;;  %v4179_v32 = vld [vmem:[%s5363_s1 + $0x3c8] sm:$0xff]  ;;  %v4209_v28 = vld [vmem:[%s5363_s1 + $0x4b8] sm:$0xff]  ;;  %v4050_v27 = vld [vmem:[#allocation2 + $0xac] sm:$0xf0] }
  0x9a   :  { %2590 = vmatpush.bf16.msra.mxu2 %v4142_v51  ;;  %2604 = vmatpush.bf16.msra.mxu3 %v4150_v52  ;;  %v193_v51 = vpack.c.bf16 %v2922_v49, %v2922_v49  ;;  %v178_v52 = vpack.c.bf16 %v2921_v50, %v2921_v50  ;;  %v202_v58 = vpop.permute.xlu1 %201  ;;  %v3000_v39 = vld [vmem:[#allocation2 + $0xa8] sm:$0xf0]  ;;  %v2998_v40 = vld [vmem:[#allocation2 + $0x30] sm:$0xf] }
  0x9b   :  { %2511 = vmatmul.bf16.vlgmr.msrb.gmra.mxu0 %v2967_v60  ;;  %2525 = vmatmul.bf16.vlgmr.msrb.gmra.mxu1 %v2971_v61  ;;  %v4166_v60 = vld [vmem:[%s5363_s1 + $0x360] sm:$0xff]  ;;  %vm204_vm4 = vcmp.eq.s32.totalorder %v4600_v11, %v202_v58  ;;  %v4192_v49 = vld [vmem:[%s5363_s1 + $0x430] sm:$0xff] }
  0x9c   :  { %2539 = vmatmul.bf16.vlgmr.msrb.gmra.mxu2 %v2975_v2  ;;  %2553 = vmatmul.bf16.vlgmr.msrb.gmra.mxu3 %v2979_v3  ;;  %195 = vst [vmem:[#allocation2 + $0x44] sm:$0xf] %v193_v51  ;;  %v4174_v61 = vld [vmem:[%s5363_s1 + $0x3a0] sm:$0xff]  ;;  %v194_v2 = vpack.c.bf16 %v2923_v63, %v2923_v63  ;;  %v4200_v51 = vld [vmem:[%s5363_s1 + $0x470] sm:$0xff] }
  0x9d   :  { %2563 = vmatpush.bf16.msra.mxu0 %v4125_v59  ;;  %2577 = vmatpush.bf16.msra.mxu1 %v4133_v1  ;;  %180 = vst [vmem:[#allocation2 + $0xb8] sm:$0xf] %v178_v52  ;;  %v4158_v59 = vld [vmem:[%s5363_s1 + $0x320] sm:$0xff]  ;;  %v2925_v1 = vsel %vm204_vm4, 1.0, %v4363_v29  ;;  %v4208_v52 = vld [vmem:[%s5363_s1 + $0x4b0] sm:$0xff] }
  0x9e   :  { %2591 = vmatpush.bf16.msra.mxu2 %v4141_v4  ;;  %2605 = vmatpush.bf16.msra.mxu3 %v4149_v5  ;;  %v210_v3 = vpack.c.bf16 %v2925_v1, %v2925_v1  ;;  %v4157_v4 = vld [vmem:[%s5363_s1 + $0x318] sm:$0xff]  ;;  %196 = vst [vmem:[#allocation2 + $0xbc] sm:$0xf] %v194_v2  ;;  %v4206_v63 = vld [vmem:[%s5363_s1 + $0x4a0] sm:$0xff] }
  0x9f   :  { %335 = vperm.xlu1 %4328, %v4420_v12   ;;  %v4139_v12 = vld [vmem:[%s5363_s1 + $0x288] sm:$0xff]  ;;  %v4165_v5 = vld [vmem:[%s5363_s1 + $0x358] sm:$0xff]  ;;  %v4214_v1 = vld [vmem:[%s5363_s1 + $0x4e0] sm:$0xff] }
  0xa0   :  { %212 = vst [vmem:[#allocation2 + $0xc0] sm:$0xf] %v210_v3  ;;  %v4189_v2 = vld [vmem:[%s5363_s1 + $0x418] sm:$0xff] }
  0xa1   :  { %2564 = vmatpush.bf16.msra.mxu0 %v4124_v6  ;;  %2578 = vmatpush.bf16.msra.mxu1 %v4132_v7  ;;  %v4173_v6 = vld [vmem:[%s5363_s1 + $0x398] sm:$0xff] }
  0xa2   :  { %2592 = vmatpush.bf16.msra.mxu2 %v4140_v8  ;;  %2606 = vmatpush.bf16.msra.mxu3 %v4148_v9  ;;  %v4181_v7 = vld [vmem:[%s5363_s1 + $0x3d8] sm:$0xff]  ;;  %v199_v8 = vpop.permute.xlu0 %198  ;;  %v215_v9 = vpop.permute.xlu2 %214 }
  0xa3   :  { %vm203_vm5 = vcmp.eq.s32.totalorder %v4600_v11, %v199_v8  ;;  %vm219_vm6 = vcmp.eq.s32.totalorder %v4600_v11, %v215_v9  ;;  %v4197_v3 = vld [vmem:[%s5363_s1 + $0x458] sm:$0xff] }
  0xa4   :  { %v2926_v20 = vsel %vm219_vm6, 1.0, %v4363_v29 }
  0xa5   :  { %2565 = vmatpush.bf16.msra.mxu0 %v4123_v18  ;;  %2579 = vmatpush.bf16.msra.mxu1 %v4131_v19  ;;  %v218_v18 = vpop.permute.xlu1 %217  ;;  %v4172_v19 = vld [vmem:[%s5363_s1 + $0x390] sm:$0xff] }
  0xa6   :  { %2593 = vmatpush.bf16.msra.mxu2 %v4139_v12  ;;  %2607 = vmatpush.bf16.msra.mxu3 %v4147_v0  ;;  %v4180_v12 = vld [vmem:[%s5363_s1 + $0x3d0] sm:$0xff]  ;;  %v2924_v0 = vsel %vm203_vm5, 1.0, %v4363_v29  ;;  %vm220_vm7 = vcmp.eq.s32.totalorder %v4600_v11, %v218_v18 }
  0xa7   :  { %v209_v21 = vpack.c.bf16 %v2924_v0, %v2924_v0  ;;  %v4196_v0 = vld [vmem:[%s5363_s1 + $0x450] sm:$0xff] }
  0xa9   :  { %2566 = vmatpush.bf16.msra.mxu0 %v4122_v22  ;;  %2580 = vmatpush.bf16.msra.mxu1 %v4130_v23  ;;  %v225_v22 = vpack.c.bf16 %v2926_v20, %v2926_v20  ;;  %v2927_v23 = vsel %vm220_vm7, 1.0, %v4363_v29  ;;  %211 = vst [vmem:[#allocation2 + $0x48] sm:$0xf] %v209_v21  ;;  %v4204_v20 = vld [vmem:[%s5363_s1 + $0x490] sm:$0xff] }
  0xaa   :  { %2594 = vmatpush.bf16.msra.mxu2 %v4138_v25  ;;  %2608 = vmatpush.bf16.msra.mxu3 %v4146_v30  ;;  %v226_v25 = vpack.c.bf16 %v2927_v23, %v2927_v23  ;;  %v4155_v30 = vld [vmem:[%s5363_s1 + $0x308] sm:$0xff]  ;;  %v231_v57 = vpop.permute.xlu2 %230 }
  0xab   :  { %227 = vst [vmem:[#allocation2 + $0x4c] sm:$0xf] %v225_v22  ;;  %vm235_vm8 = vcmp.eq.s32.totalorder %v4600_v11, %v231_v57  ;;  %v4232_v57 = vld [vmem:[%s5363_s1 + $0x570] sm:$0xff] }
  0xac   :  { %2567 = vmatmul.bf16.vlgmr.msra.gmra.mxu0 %v2983_v38  ;;  %2581 = vmatmul.bf16.vlgmr.msra.gmra.mxu1 %v2987_v41  ;;  %228 = vst [vmem:[#allocation2 + $0xc4] sm:$0xf] %v226_v25  ;;  %v4049_v38 = vld [vmem:[#allocation2 + $0xa4] sm:$0xf0]  ;;  %v3008_v41 = vld [vmem:[#allocation2 + $0xb0] sm:$0xf0]  ;;  %v234_v25 = vpop.permute.xlu0 %233 }
  0xad   :  { %2615 = vmatpush.bf16.msrb.mxu0 %v4161_v31  ;;  %2629 = vmatpush.bf16.msrb.mxu1 %v4169_v26  ;;  %v4163_v31 = vld [vmem:[%s5363_s1 + $0x348] sm:$0xff]  ;;  %v2999_v42 = vor.u32 %v4049_v38, %v2998_v40  ;;  %v2928_v58 = vsel %vm235_vm8, 1.0, %v4363_v29  ;;  %vm236_vm3 = vcmp.eq.s32.totalorder %v4600_v11, %v234_v25  ;;  %v3014_v40 = vld [vmem:[#allocation2 + $0x40] sm:$0xf]  ;;  %v4244_v25 = vld [vmem:[%s5363_s1 + $0x5d0] sm:$0xff] }
  0xae   :  { %2643 = vmatpush.bf16.msrb.mxu2 %v4177_v33  ;;  %2657 = vmatpush.bf16.msrb.mxu3 %v4185_v34  ;;  %v4171_v26 = vld [vmem:[%s5363_s1 + $0x388] sm:$0xff]  ;;  %v4154_v33 = vld [vmem:[%s5363_s1 + $0x300] sm:$0xff] }
  0xaf   :  { %2595 = vmatmul.bf16.vlgmr.msra.gmra.mxu2 %v2991_v45  ;;  %2609 = vmatmul.bf16.vlgmr.msra.gmra.mxu3 %v2995_v46  ;;  %v4162_v34 = vld [vmem:[%s5363_s1 + $0x340] sm:$0xff] }
  0xb1   :  { %2616 = vmatpush.bf16.msrb.mxu0 %v4160_v43  ;;  %2630 = vmatpush.bf16.msrb.mxu1 %v4168_v44  ;;  %v4034_v43 = vld [vmem:[#allocation2 + $0x34] sm:$0xf]  ;;  %v3006_v44 = vld [vmem:[#allocation2 + $0x38] sm:$0xf] }
  0xb2   :  { %2644 = vmatpush.bf16.msrb.mxu2 %v4176_v47  ;;  %2658 = vmatpush.bf16.msrb.mxu3 %v4184_v48  ;;  %v3003_v45 = vor.u32 %v4034_v43, %v3000_v39  ;;  %v3007_v46 = vor.u32 %v4050_v27, %v3006_v44  ;;  %v4035_v47 = vld [vmem:[#allocation2 + $0x3c] sm:$0xf]  ;;  %v4194_v39 = vld [vmem:[%s5363_s1 + $0x440] sm:$0xff]  ;;  %v3022_v43 = vld [vmem:[#allocation2 + $0x48] sm:$0xf] }
  0xb3   :  { %v4217_v48 = vld [vmem:[%s5363_s1 + $0x4f8] sm:$0xff]  ;;  %v3011_v50 = vor.u32 %v4035_v47, %v3008_v41  ;;  %v4202_v27 = vld [vmem:[%s5363_s1 + $0x480] sm:$0xff] }
  0xb4   :  { %v4051_v41 = vld [vmem:[#allocation2 + $0xb4] sm:$0xf0]  ;;  %v4052_v44 = vld [vmem:[#allocation2 + $0xbc] sm:$0xf0]  ;;  %v3016_v47 = vld [vmem:[#allocation2 + $0xb8] sm:$0xf0] }
  0xb5   :  { %2617 = vmatpush.bf16.msrb.mxu0 %v4159_v53  ;;  %2631 = vmatpush.bf16.msrb.mxu1 %v4167_v54  ;;  %v4216_v53 = vld [vmem:[%s5363_s1 + $0x4f0] sm:$0xff]  ;;  %v4191_v54 = vld [vmem:[%s5363_s1 + $0x428] sm:$0xff] }
  0xb6   :  { %2645 = vmatpush.bf16.msrb.mxu2 %v4175_v55  ;;  %2659 = vmatpush.bf16.msrb.mxu3 %v4183_v56  ;;  %v4199_v55 = vld [vmem:[%s5363_s1 + $0x468] sm:$0xff] }
  0xb7   :  { %v4207_v56 = vld [vmem:[%s5363_s1 + $0x4a8] sm:$0xff] }
  0xb9   :  { %2618 = vmatpush.bf16.msrb.mxu0 %v4158_v59  ;;  %2632 = vmatpush.bf16.msrb.mxu1 %v4166_v60  ;;  %v4215_v59 = vld [vmem:[%s5363_s1 + $0x4e8] sm:$0xff]  ;;  %v4190_v60 = vld [vmem:[%s5363_s1 + $0x420] sm:$0xff] }
  0xba   :  { %2646 = vmatpush.bf16.msrb.mxu2 %v4174_v61  ;;  %2660 = vmatpush.bf16.msrb.mxu3 %v4182_v62  ;;  %v241_v61 = vpack.c.bf16 %v2928_v58, %v2928_v58  ;;  %v4198_v62 = vld [vmem:[%s5363_s1 + $0x460] sm:$0xff] }
  0xbc   :  { %243 = vst [vmem:[#allocation2 + $0x50] sm:$0xf] %v241_v61  ;;  %v4223_v61 = vld [vmem:[%s5363_s1 + $0x528] sm:$0xff] }
  0xbd   :  { %2619 = vmatpush.bf16.msrb.mxu0 %v4157_v4  ;;  %2633 = vmatpush.bf16.msrb.mxu1 %v4165_v5  ;;  %v4205_v4 = vld [vmem:[%s5363_s1 + $0x498] sm:$0xff]  ;;  %v250_v5 = vpop.permute.xlu2 %249 }
  0xbe   :  { %2647 = vmatpush.bf16.msrb.mxu2 %v4173_v6  ;;  %2661 = vmatpush.bf16.msrb.mxu3 %v4181_v7  ;;  %v247_v6 = vpop.permute.xlu1 %246  ;;  %vm256_vm9 = vcmp.eq.s32.totalorder %v4600_v11, %v250_v5  ;;  %vm257_vm10 = vcmp.eq.s32.totalorder %v4604_v13, %v250_v5  ;;  %vm258_vm11 = vcmp.eq.s32.totalorder %v4607_v14, %v250_v5 }
  0xbf   :  { %vm259_vm12 = vcmp.eq.s32.totalorder %v4610_v15, %v250_v5  ;;  %vm260_vm14 = vcmp.eq.s32.totalorder %v4613_v16, %v250_v5  ;;  %v2935_v7 = vsel %vm256_vm9, 1.0, %v4363_v29  ;;  %v2936_v8 = vsel %vm257_vm10, 1.0, %v4363_v29  ;;  %v4246_v5 = vld [vmem:[%s5363_s1 + $0x5e0] sm:$0xff] }
  0xc0   :  { %v2937_v9 = vsel %vm258_vm11, 1.0, %v4363_v29  ;;  %v2938_v18 = vsel %vm259_vm12, 1.0, %v4363_v29  ;;  %vm251_vm15 = vcmp.eq.s32.totalorder %v4600_v11, %v247_v6  ;;  %vm252_vm13 = vcmp.eq.s32.totalorder %v4604_v13, %v247_v6 }
  0xc1   :  { %2620 = vmatpush.bf16.msrb.mxu0 %v4156_v10  ;;  %2634 = vmatpush.bf16.msrb.mxu1 %v4164_v17  ;;  %v4213_v10 = vld [vmem:[%s5363_s1 + $0x4d8] sm:$0xff]  ;;  %v4188_v17 = vld [vmem:[%s5363_s1 + $0x410] sm:$0xff]  ;;  %v285_v21 = vpack.c.bf16 %v2938_v18, %v2937_v9  ;;  %v2930_v23 = vsel %vm251_vm15, 1.0, %v4363_v29  ;;  %vm253_vm0 = vcmp.eq.s32.totalorder %v4607_v14, %v247_v6  ;;  %vm254_vm1 = vcmp.eq.s32.totalorder %v4610_v15, %v247_v6  ;;  %v4187_v15 = vld [vmem:[%s5363_s1 + $0x408] sm:$0xff] }
  0xc2   :  { %2648 = vmatpush.bf16.msrb.mxu2 %v4172_v19  ;;  %2662 = vmatpush.bf16.msrb.mxu3 %v4180_v12  ;;  %v2939_v19 = vsel %vm260_vm14, 1.0, %v4363_v29  ;;  %v284_v12 = vpack.c.bf16 %v2936_v8, %v2935_v7  ;;  %vm255_vm2 = vcmp.eq.s32.totalorder %v4613_v16, %v247_v6  ;;  %v4212_v14 = vld [vmem:[%s5363_s1 + $0x4d0] sm:$0xff]  ;;  %v4221_v6 = vld [vmem:[%s5363_s1 + $0x518] sm:$0xff]  ;;  %vm2867_vm12 = vcmask 261120  }
  0xc3   :  { %v286_v22 = vpack.c.bf16 %v2939_v19, %v2939_v19  ;;  %291 = vst [vmem:[#allocation2 + $0xd4] sm:$0xff] %v285_v21  ;;  %v4229_v7 = vld [vmem:[%s5363_s1 + $0x558] sm:$0xff]  ;;  %v4236_v21 = vld [vmem:[%s5363_s1 + $0x590] sm:$0xff] }
  0xc4   :  { %290 = vst [vmem:[#allocation2 + $0xcc] sm:$0xff] %v284_v12  ;;  %v4237_v9 = vld [vmem:[%s5363_s1 + $0x598] sm:$0xff]  ;;  %v4220_v12 = vld [vmem:[%s5363_s1 + $0x510] sm:$0xff] }
  0xc5   :  { %2621 = vmatpush.bf16.msrb.mxu0 %v4155_v30  ;;  %2635 = vmatpush.bf16.msrb.mxu1 %v4163_v31  ;;  %v2931_v30 = vsel %vm252_vm13, 1.0, %v4363_v29  ;;  %v2932_v31 = vsel %vm253_vm0, 1.0, %v4363_v29  ;;  %292 = vst [vmem:[#allocation2 + $0xdc] sm:$0xf] %v286_v22  ;;  %v298_v8 = vpop.permute.xlu2 %297  ;;  %v4245_v18 = vld [vmem:[%s5363_s1 + $0x5d8] sm:$0xff] }
  0xc6   :  { %2649 = vmatpush.bf16.msrb.mxu2 %v4171_v26  ;;  %2663 = vmatpush.bf16.msrb.mxu3 %v4179_v32  ;;  %v2933_v26 = vsel %vm254_vm1, 1.0, %v4363_v29  ;;  %v2934_v32 = vsel %vm255_vm2, 1.0, %v4363_v29  ;;  %vm301_vm4 = vcmp.eq.s32.totalorder %v4600_v11, %v298_v8  ;;  %vm302_vm5 = vcmp.eq.s32.totalorder %v4604_v13, %v298_v8 }
  0xc7   :  { %v282_v16 = vpack.c.bf16 %v2933_v26, %v2932_v31  ;;  %v4219_v31 = vld [vmem:[%s5363_s1 + $0x508] sm:$0xff] }
  0xc8   :  { %v4235_v26 = vld [vmem:[%s5363_s1 + $0x588] sm:$0xff] }
  0xc9   :  { %2622 = vmatpush.bf16.msrb.mxu0 %v4154_v33  ;;  %2636 = vmatpush.bf16.msrb.mxu1 %v4162_v34  ;;  %v281_v33 = vpack.c.bf16 %v2931_v30, %v2930_v23  ;;  %v283_v34 = vpack.c.bf16 %v2934_v32, %v2934_v32  ;;  %288 = vst [vmem:[#allocation2 + $0x5c] sm:$0xff] %v282_v16  ;;  %v4243_v32 = vld [vmem:[%s5363_s1 + $0x5c8] sm:$0xff]  ;;  %v4257_v16 = vld [vmem:[%s5363_s1 + $0x638] sm:$0xff] }
  0xca   :  { %2650 = vmatpush.bf16.msrb.mxu2 %v4170_v35  ;;  %2664 = vmatpush.bf16.msrb.mxu3 %v4178_v24  ;;  %v4195_v35 = vld [vmem:[%s5363_s1 + $0x448] sm:$0xff] }
  0xcb   :  { %v4203_v24 = vld [vmem:[%s5363_s1 + $0x488] sm:$0xff]  ;;  %287 = vst [vmem:[#allocation2 + $0x54] sm:$0xff] %v281_v33  ;;  %v4218_v33 = vld [vmem:[%s5363_s1 + $0x500] sm:$0xff] }
  0xcc   :  { %2623 = vmatmul.bf16.vlgmr.msrb.gmra.mxu0 %v2999_v42  ;;  %2637 = vmatmul.bf16.vlgmr.msrb.gmra.mxu1 %v3003_v45  ;;  %289 = vst [vmem:[#allocation2 + $0x64] sm:$0xf] %v283_v34  ;;  %v4225_v42 = vld [vmem:[%s5363_s1 + $0x538] sm:$0xff]  ;;  %v3030_v34 = vld [vmem:[#allocation2 + $0x50] sm:$0xf] }
  0xcd   :  { %2671 = vmatpush.bf16.msra.mxu0 %v4193_v36  ;;  %2685 = vmatpush.bf16.msra.mxu1 %v4201_v37  ;;  %v2929_v36 = vsel %vm236_vm3, 1.0, %v4363_v29  ;;  %v4211_v37 = vld [vmem:[%s5363_s1 + $0x4c8] sm:$0xff]  ;;  %v4233_v45 = vld [vmem:[%s5363_s1 + $0x578] sm:$0xff] }
  0xce   :  { %2699 = vmatpush.bf16.msra.mxu2 %v4209_v28  ;;  %2665 = vmatmul.bf16.vlgmr.msrb.gmra.mxu3 %v3011_v50  ;;  %v242_v38 = vpack.c.bf16 %v2929_v36, %v2929_v36  ;;  %v4186_v28 = vld [vmem:[%s5363_s1 + $0x400] sm:$0xff] }
  0xcf   :  { %2651 = vmatmul.bf16.vlgmr.msrb.gmra.mxu2 %v3007_v46  ;;  %2713 = vmatpush.bf16.msra.mxu3 %v4217_v48  ;;  %v4036_v46 = vld [vmem:[#allocation2 + $0x44] sm:$0xf]  ;;  %v4241_v48 = vld [vmem:[%s5363_s1 + $0x5b8] sm:$0xff] }
  0xd0   :  { %244 = vst [vmem:[#allocation2 + $0xc8] sm:$0xf] %v242_v38  ;;  %v4210_v50 = vld [vmem:[%s5363_s1 + $0x4c0] sm:$0xff]  ;;  %v4273_v38 = vld [vmem:[%s5363_s1 + $0x6b8] sm:$0xff] }
  0xd1   :  { %2672 = vmatpush.bf16.msra.mxu0 %v4192_v49  ;;  %2686 = vmatpush.bf16.msra.mxu1 %v4200_v51  ;;  %v3015_v49 = vor.u32 %v4051_v41, %v3014_v40  ;;  %v3023_v51 = vor.u32 %v4052_v44, %v3022_v43  ;;  %v4039_v41 = vld [vmem:[#allocation2 + $0x5c] sm:$0xf] }
  0xd2   :  { %2700 = vmatpush.bf16.msra.mxu2 %v4208_v52  ;;  %v4037_v52 = vld [vmem:[#allocation2 + $0x4c] sm:$0xf]  ;;  %v3038_v36 = vld [vmem:[#allocation2 + $0x58] sm:$0xf] }
  0xd3   :  { %2714 = vmatpush.bf16.msra.mxu3 %v4216_v53  ;;  %v3024_v53 = vld [vmem:[#allocation2 + $0xc0] sm:$0xf0]  ;;  %v4281_v44 = vld [vmem:[%s5363_s1 + $0x6f8] sm:$0xff] }
  0xd4   :  { %v3027_v58 = vor.u32 %v4037_v52, %v3024_v53  ;;  %v4255_v52 = vld [vmem:[%s5363_s1 + $0x628] sm:$0xff] }
  0xd5   :  { %2673 = vmatpush.bf16.msra.mxu0 %v4191_v54  ;;  %2687 = vmatpush.bf16.msra.mxu1 %v4199_v55  ;;  %v4249_v54 = vld [vmem:[%s5363_s1 + $0x5f8] sm:$0xff]  ;;  %v3019_v55 = vor.u32 %v4036_v46, %v3016_v47  ;;  %v4256_v46 = vld [vmem:[%s5363_s1 + $0x630] sm:$0xff] }
  0xd6   :  { %2701 = vmatpush.bf16.msra.mxu2 %v4207_v56  ;;  %v4224_v56 = vld [vmem:[%s5363_s1 + $0x530] sm:$0xff] }
  0xd7   :  { %2715 = vmatpush.bf16.msra.mxu3 %v4215_v59  ;;  %v4240_v59 = vld [vmem:[%s5363_s1 + $0x5b0] sm:$0xff] }
  0xd9   :  { %2674 = vmatpush.bf16.msra.mxu0 %v4190_v60  ;;  %2688 = vmatpush.bf16.msra.mxu1 %v4198_v62  ;;  %v4248_v60 = vld [vmem:[%s5363_s1 + $0x5f0] sm:$0xff]  ;;  %v4231_v62 = vld [vmem:[%s5363_s1 + $0x568] sm:$0xff] }
  0xda   :  { %2702 = vmatpush.bf16.msra.mxu2 %v4206_v63  ;;  %v4239_v63 = vld [vmem:[%s5363_s1 + $0x5a8] sm:$0xff] }
  0xdb   :  { %2716 = vmatpush.bf16.msra.mxu3 %v4214_v1  ;;  %v4247_v1 = vld [vmem:[%s5363_s1 + $0x5e8] sm:$0xff] }
  0xdd   :  { %2675 = vmatpush.bf16.msra.mxu0 %v4189_v2  ;;  %2689 = vmatpush.bf16.msra.mxu1 %v4197_v3  ;;  %v4222_v2 = vld [vmem:[%s5363_s1 + $0x520] sm:$0xff] }
  0xde   :  { %2703 = vmatpush.bf16.msra.mxu2 %v4205_v4  ;;  %v4230_v3 = vld [vmem:[%s5363_s1 + $0x560] sm:$0xff] }
  0xdf   :  { %2717 = vmatpush.bf16.msra.mxu3 %v4213_v10  ;;  %v4238_v4 = vld [vmem:[%s5363_s1 + $0x5a0] sm:$0xff]  ;;  %v2942_v10 = vsel %vm301_vm4, 1.0, %v4363_v29 }
  0xe1   :  { %2676 = vmatpush.bf16.msra.mxu0 %v4188_v17  ;;  %2690 = vmatpush.bf16.msra.mxu1 %v4196_v0  ;;  %v2943_v17 = vsel %vm302_vm5, 1.0, %v4363_v29  ;;  %v4228_v0 = vld [vmem:[%s5363_s1 + $0x550] sm:$0xff] }
  0xe2   :  { %2704 = vmatpush.bf16.msra.mxu2 %v4204_v20  ;;  %v312_v19 = vpack.c.bf16 %v2943_v17, %v2942_v10  ;;  %v295_v20 = vpop.permute.xlu1 %294  ;;  %v4252_v10 = vld [vmem:[%s5363_s1 + $0x610] sm:$0xff] }
  0xe3   :  { %2718 = vmatpush.bf16.msra.mxu3 %v4212_v14  ;;  %vm299_vm6 = vcmp.eq.s32.totalorder %v4600_v11, %v295_v20  ;;  %vm300_vm7 = vcmp.eq.s32.totalorder %v4604_v13, %v295_v20  ;;  %v4227_v13 = vld [vmem:[%s5363_s1 + $0x548] sm:$0xff]  ;;  %v4226_v14 = vld [vmem:[%s5363_s1 + $0x540] sm:$0xff] }
  0xe4   :  { %314 = vst [vmem:[#allocation2 + $0xe0] sm:$0xff] %v312_v19  ;;  %v2940_v22 = vsel %vm299_vm6, 1.0, %v4363_v29  ;;  %v2941_v23 = vsel %vm300_vm7, 1.0, %v4363_v29  ;;  %v4267_v20 = vld [vmem:[%s5363_s1 + $0x688] sm:$0xff] }
  0xe5   :  { %2677 = vmatpush.bf16.msra.mxu0 %v4187_v15  ;;  %2691 = vmatpush.bf16.msra.mxu1 %v4195_v35  ;;  %v311_v30 = vpack.c.bf16 %v2941_v23, %v2940_v22  ;;  %v4234_v15 = vld [vmem:[%s5363_s1 + $0x580] sm:$0xff]  ;;  %v4053_v35 = vld [vmem:[#allocation2 + $0xc4] sm:$0xf0] }
  0xe6   :  { %2705 = vmatpush.bf16.msra.mxu2 %v4203_v24  ;;  %v4265_v24 = vld [vmem:[%s5363_s1 + $0x678] sm:$0xff]  ;;  %v3031_v40 = vor.u32 %v4053_v35, %v3030_v34  ;;  %v4250_v22 = vld [vmem:[%s5363_s1 + $0x600] sm:$0xff] }
  0xe7   :  { %2719 = vmatpush.bf16.msra.mxu3 %v4211_v37  ;;  %313 = vst [vmem:[#allocation2 + $0x68] sm:$0xff] %v311_v30  ;;  %v4054_v37 = vld [vmem:[#allocation2 + $0xcc] sm:$0xf0]  ;;  %v4258_v23 = vld [vmem:[%s5363_s1 + $0x640] sm:$0xff] }
  0xe8   :  { %v3039_v43 = vor.u32 %v4054_v37, %v3038_v36  ;;  %v3046_v30 = vld [vmem:[#allocation2 + $0x60] sm:$0xf] }
  0xe9   :  { %2678 = vmatpush.bf16.msra.mxu0 %v4186_v28  ;;  %2692 = vmatpush.bf16.msra.mxu1 %v4194_v39  ;;  %v4038_v28 = vld [vmem:[#allocation2 + $0x54] sm:$0xf]  ;;  %v3032_v39 = vld [vmem:[#allocation2 + $0xc8] sm:$0xf0] }
  0xea   :  { %2706 = vmatpush.bf16.msra.mxu2 %v4202_v27  ;;  %v4242_v27 = vld [vmem:[%s5363_s1 + $0x5c0] sm:$0xff] }
  0xeb   :  { %2720 = vmatpush.bf16.msra.mxu3 %v4210_v50 }
  0xec   :  { %2679 = vmatmul.bf16.vlgmr.msra.gmra.mxu0 %v3015_v49  ;;  %2693 = vmatmul.bf16.vlgmr.msra.gmra.mxu1 %v3019_v55  ;;  %v4272_v49 = vld [vmem:[%s5363_s1 + $0x6b0] sm:$0xff] }
  0xed   :  { %2727 = vmatpush.bf16.msrb.mxu0 %v4225_v42  ;;  %2741 = vmatpush.bf16.msrb.mxu1 %v4233_v45  ;;  %v3040_v42 = vld [vmem:[#allocation2 + $0xd0] sm:$0xf0]  ;;  %v3035_v45 = vor.u32 %v4038_v28, %v3032_v39 }
  0xee   :  { %2755 = vmatpush.bf16.msrb.mxu2 %v4241_v48  ;;  %2721 = vmatmul.bf16.vlgmr.msra.gmra.mxu3 %v3027_v58  ;;  %v3043_v47 = vor.u32 %v4039_v41, %v3040_v42  ;;  %v4264_v48 = vld [vmem:[%s5363_s1 + $0x670] sm:$0xff]  ;;  %v4279_v58 = vld [vmem:[%s5363_s1 + $0x6e8] sm:$0xff]  ;;  %v4286_v41 = vld [vmem:[%s5363_s1 + $0x720] sm:$0xff] }
  0xef   :  { %2707 = vmatmul.bf16.vlgmr.msra.gmra.mxu2 %v3023_v51  ;;  %2769 = vmatpush.bf16.msrb.mxu3 %v4249_v54  ;;  %v4280_v51 = vld [vmem:[%s5363_s1 + $0x6f0] sm:$0xff]  ;;  %v4263_v54 = vld [vmem:[%s5363_s1 + $0x668] sm:$0xff]  ;;  %v4294_v42 = vld [vmem:[%s5363_s1 + $0x760] sm:$0xff] }
  0xf0   :  { %v4041_v35 = vld [vmem:[#allocation2 + $0x6c] sm:$0xf]  ;;  %v4296_v39 = vld [vmem:[%s5363_s1 + $0x770] sm:$0xff] }
  0xf1   :  { %2728 = vmatpush.bf16.msrb.mxu0 %v4224_v56  ;;  %2742 = vmatpush.bf16.msrb.mxu1 %v4232_v57  ;;  %v4271_v56 = vld [vmem:[%s5363_s1 + $0x6a8] sm:$0xff] }
  0xf2   :  { %2756 = vmatpush.bf16.msrb.mxu2 %v4240_v59  ;;  %v4254_v59 = vld [vmem:[%s5363_s1 + $0x620] sm:$0xff] }
  0xf3   :  { %2770 = vmatpush.bf16.msrb.mxu3 %v4248_v60 }
  0xf5   :  { %2729 = vmatpush.bf16.msrb.mxu0 %v4223_v61  ;;  %2743 = vmatpush.bf16.msrb.mxu1 %v4231_v62  ;;  %v4262_v61 = vld [vmem:[%s5363_s1 + $0x660] sm:$0xff] }
  0xf6   :  { %2757 = vmatpush.bf16.msrb.mxu2 %v4239_v63  ;;  %v4270_v63 = vld [vmem:[%s5363_s1 + $0x6a0] sm:$0xff] }
  0xf7   :  { %2771 = vmatpush.bf16.msrb.mxu3 %v4247_v1  ;;  %v333_v1 = vpop.permute.xlu2 %332 }
  0xf8   :  { %vm337_vm10 = vcmp.eq.s32.totalorder %v4600_v11, %v333_v1 }
  0xf9   :  { %2730 = vmatpush.bf16.msrb.mxu0 %v4222_v2  ;;  %2744 = vmatpush.bf16.msrb.mxu1 %v4230_v3  ;;  %v4278_v2 = vld [vmem:[%s5363_s1 + $0x6e0] sm:$0xff]  ;;  %v4253_v3 = vld [vmem:[%s5363_s1 + $0x618] sm:$0xff] }
  0xfa   :  { %2758 = vmatpush.bf16.msrb.mxu2 %v4238_v4  ;;  %v2946_v4 = vsel %vm337_vm10, 1.0, %v4363_v29 }
  0xfb   :  { %2772 = vmatpush.bf16.msrb.mxu3 %v4246_v5  ;;  %v4261_v5 = vld [vmem:[%s5363_s1 + $0x658] sm:$0xff] }
  0xfd   :  { %2731 = vmatpush.bf16.msrb.mxu0 %v4221_v6  ;;  %2745 = vmatpush.bf16.msrb.mxu1 %v4229_v7  ;;  %v343_v6 = vpack.c.bf16 %v2946_v4, %v2946_v4  ;;  %v4269_v7 = vld [vmem:[%s5363_s1 + $0x698] sm:$0xff] }
  0xfe   :  { %2759 = vmatpush.bf16.msrb.mxu2 %v4237_v9  ;;  %v4277_v9 = vld [vmem:[%s5363_s1 + $0x6d8] sm:$0xff] }
  0xff   :  { %2773 = vmatpush.bf16.msrb.mxu3 %v4245_v18  ;;  %345 = vst [vmem:[#allocation2 + $0x74] sm:$0xf] %v343_v6  ;;  %v4260_v18 = vld [vmem:[%s5363_s1 + $0x650] sm:$0xff] }
 0x101   :  { %2732 = vmatpush.bf16.msrb.mxu0 %v4220_v12  ;;  %2746 = vmatpush.bf16.msrb.mxu1 %v4228_v0  ;;  %v4268_v12 = vld [vmem:[%s5363_s1 + $0x690] sm:$0xff]  ;;  %v4259_v0 = vld [vmem:[%s5363_s1 + $0x648] sm:$0xff] }
 0x102   :  { %2760 = vmatpush.bf16.msrb.mxu2 %v4236_v21  ;;  %v320_v50 = vpop.permute.xlu1 %319  ;;  %v317_v57 = vpop.permute.xlu0 %316  ;;  %v4275_v21 = vld [vmem:[%s5363_s1 + $0x6c8] sm:$0xff] }
 0x103   :  { %2774 = vmatpush.bf16.msrb.mxu3 %v4244_v25  ;;  %vm322_vm8 = vcmp.eq.s32.totalorder %v4600_v11, %v320_v50  ;;  %vm321_vm9 = vcmp.eq.s32.totalorder %v4600_v11, %v317_v57  ;;  %v4266_v25 = vld [vmem:[%s5363_s1 + $0x680] sm:$0xff] }
 0x104   :  { %v2945_v53 = vsel %vm322_vm8, 1.0, %v4363_v29  ;;  %v2944_v60 = vsel %vm321_vm9, 1.0, %v4363_v29  ;;  %v4290_v50 = vld [vmem:[%s5363_s1 + $0x740] sm:$0xff] }
 0x105   :  { %2733 = vmatpush.bf16.msrb.mxu0 %v4219_v31  ;;  %2747 = vmatpush.bf16.msrb.mxu1 %v4227_v13  ;;  %v328_v55 = vpack.c.bf16 %v2945_v53, %v2945_v53  ;;  %v327_v62 = vpack.c.bf16 %v2944_v60, %v2944_v60  ;;  %v4055_v31 = vld [vmem:[#allocation2 + $0xd4] sm:$0xf0] }
 0x106   :  { %2761 = vmatpush.bf16.msrb.mxu2 %v4235_v26  ;;  %v4289_v13 = vld [vmem:[%s5363_s1 + $0x738] sm:$0xff]  ;;  %v4040_v26 = vld [vmem:[#allocation2 + $0x64] sm:$0xf]  ;;  %v3047_v34 = vor.u32 %v4055_v31, %v3046_v30 }
 0x107   :  { %2775 = vmatpush.bf16.msrb.mxu3 %v4243_v32  ;;  %330 = vst [vmem:[#allocation2 + $0xe8] sm:$0xf] %v328_v55  ;;  %v3048_v32 = vld [vmem:[#allocation2 + $0xd8] sm:$0xf0] }
 0x108   :  { %329 = vst [vmem:[#allocation2 + $0x70] sm:$0xf] %v327_v62  ;;  %v3051_v36 = vor.u32 %v4040_v26, %v3048_v32  ;;  %v2456_v53 = vpop.f32.mrf.mxu0 }
 0x109   :  { %2734 = vmatpush.bf16.msrb.mxu0 %v4218_v33  ;;  %2748 = vmatpush.bf16.msrb.mxu1 %v4226_v14  ;;  %v4297_v33 = vld [vmem:[%s5363_s1 + $0x778] sm:$0xff]  ;;  %v3054_v14 = vld [vmem:[#allocation2 + $0x68] sm:$0xf] }
 0x10a   :  { %2762 = vmatpush.bf16.msrb.mxu2 %v4234_v15  ;;  %v4056_v15 = vld [vmem:[#allocation2 + $0xdc] sm:$0xf0] }
 0x10b   :  { %2776 = vmatpush.bf16.msrb.mxu3 %v4242_v27  ;;  %v3055_v37 = vor.u32 %v4056_v15, %v3054_v14  ;;  %v4287_v27 = vld [vmem:[%s5363_s1 + $0x728] sm:$0xff] }
 0x10c   :  { %2735 = vmatmul.bf16.vlgmr.msrb.gmra.mxu0 %v3031_v40  ;;  %2749 = vmatmul.bf16.vlgmr.msrb.gmra.mxu1 %v3035_v45  ;;  %v4295_v40 = vld [vmem:[%s5363_s1 + $0x768] sm:$0xff]  ;;  %v4284_v45 = vld [vmem:[%s5363_s1 + $0x710] sm:$0xff] }
 0x10d   :  { %2783 = vmatpush.bf16.msra.mxu0 %v4257_v16  ;;  %2797 = vmatpush.bf16.msra.mxu1 %v4265_v24  ;;  %v4274_v16 = vld [vmem:[%s5363_s1 + $0x6c0] sm:$0xff] }
 0x10e   :  { %2811 = vmatpush.bf16.msra.mxu2 %v4273_v38  ;;  %2777 = vmatmul.bf16.vlgmr.msrb.gmra.mxu3 %v3043_v47  ;;  %v3056_v24 = vld [vmem:[#allocation2 + $0xe0] sm:$0xf0]  ;;  %v4288_v38 = vld [vmem:[%s5363_s1 + $0x730] sm:$0xff]  ;;  %v4283_v47 = vld [vmem:[%s5363_s1 + $0x708] sm:$0xff] }
 0x10f   :  { %2763 = vmatmul.bf16.vlgmr.msrb.gmra.mxu2 %v3039_v43  ;;  %2825 = vmatpush.bf16.msra.mxu3 %v4281_v44  ;;  %v3059_v28 = vor.u32 %v4041_v35, %v3056_v24  ;;  %v4285_v43 = vld [vmem:[%s5363_s1 + $0x718] sm:$0xff]  ;;  %v4057_v55 = vld [vmem:[#allocation2 + $0xe4] sm:$0xf0]  ;;  %v2498_v62 = vpop.f32.mrf.mxu3 }
 0x110   :  { %v4293_v44 = vld [vmem:[%s5363_s1 + $0x758] sm:$0xff]  ;;  %v2458_v60 = vpop.f32.mrf.mxu0 }
 0x111   :  { %2784 = vmatpush.bf16.msra.mxu0 %v4256_v46  ;;  %2798 = vmatpush.bf16.msra.mxu1 %v4264_v48  ;;  %v336_v8 = vpop.permute.xlu1 %335  ;;  %v4292_v46 = vld [vmem:[%s5363_s1 + $0x750] sm:$0xff]  ;;  %v4291_v48 = vld [vmem:[%s5363_s1 + $0x748] sm:$0xff] }
 0x112   :  { %2812 = vmatpush.bf16.msra.mxu2 %v4272_v49  ;;  %vm338_vm11 = vcmp.eq.s32.totalorder %v4600_v11, %v336_v8  ;;  %v4276_v11 = vld [vmem:[%s5363_s1 + $0x6d0] sm:$0xff]  ;;  %v4282_v49 = vld [vmem:[%s5363_s1 + $0x700] sm:$0xff] }
 0x113   :  { %2826 = vmatpush.bf16.msra.mxu3 %v4280_v51  ;;  %v2947_v17 = vsel %vm338_vm11, 1.0, %v4363_v29  ;;  %v4251_v29 = vld [vmem:[%s5363_s1 + $0x608] sm:$0xff]  ;;  %v4042_v51 = vld [vmem:[#allocation2 + $0x74] sm:$0xf]  ;;  %s4367_s1 = smov [#allocation3]  }
 0x114   :  { %v344_v19 = vpack.c.bf16 %v2947_v17, %v2947_v17  ;;  %s2874_s29 = sshll.u32 %s4367_s1, 4  ;;  %s2875_s29 = int_to_ptr.vmem [resolvable:$true] %s2874_s29 }
 0x115   :  { %2785 = vmatpush.bf16.msra.mxu0 %v4255_v52  ;;  %2799 = vmatpush.bf16.msra.mxu1 %v4263_v54  ;;  %v3062_v54 = vld [vmem:[#allocation2 + $0x70] sm:$0xf] }
 0x116   :  { %2813 = vmatpush.bf16.msra.mxu2 %v4271_v56  ;;  %346 = vst [vmem:[#allocation2 + $0xec] sm:$0xf] %v344_v19  ;;  %v2470_v56 = vpop.f32.mrf.mxu1 }
 0x117   :  { %2827 = vmatpush.bf16.msra.mxu3 %v4279_v58  ;;  %v3063_v58 = vor.u32 %v4057_v55, %v3062_v54 }
 0x118   :  { %v2512_v1 = vpop.f32.mrf.mxu0 }
 0x119   :  { %2786 = vmatpush.bf16.msra.mxu0 %v4254_v59  ;;  %2800 = vmatpush.bf16.msra.mxu1 %v4262_v61  ;;  %v2484_v59 = vpop.f32.mrf.mxu2 }
 0x11a   :  { %2814 = vmatpush.bf16.msra.mxu2 %v4270_v63 }
 0x11b   :  { %2828 = vmatpush.bf16.msra.mxu3 %v4278_v2 }
 0x11d   :  { %2787 = vmatpush.bf16.msra.mxu0 %v4253_v3  ;;  %2801 = vmatpush.bf16.msra.mxu1 %v4261_v5  ;;  %v3064_v52 = vld [vmem:[#allocation2 + $0xe8] sm:$0xf0]  ;;  %v2500_v3 = vpop.f32.mrf.mxu3 }
 0x11e   :  { %2815 = vmatpush.bf16.msra.mxu2 %v4269_v7  ;;  %v3067_v57 = vor.u32 %v4042_v51, %v3064_v52  ;;  %v2472_v61 = vpop.f32.mrf.mxu1 }
 0x11f   :  { %2829 = vmatpush.bf16.msra.mxu3 %v4277_v9 }
 0x120   :  { %v2514_v5 = vpop.f32.mrf.mxu0 }
 0x121   :  { %2788 = vmatpush.bf16.msra.mxu0 %v4252_v10  ;;  %2802 = vmatpush.bf16.msra.mxu1 %v4260_v18  ;;  %v2486_v63 = vpop.f32.mrf.mxu2 }
 0x122   :  { %2816 = vmatpush.bf16.msra.mxu2 %v4268_v12  ;;  %v2471_v12 = vadd.f32 %v2470_v56, %v2456_v53 }
 0x123   :  { %2830 = vmatpush.bf16.msra.mxu3 %v4276_v11 }
 0x125   :  { %2789 = vmatpush.bf16.msra.mxu0 %v4251_v29  ;;  %2803 = vmatpush.bf16.msra.mxu1 %v4259_v0  ;;  %v2554_v7 = vpop.f32.mrf.mxu3  ;;  %v2485_v0 = vadd.f32 %v2484_v59, %v2471_v12 }
 0x126   :  { %2817 = vmatpush.bf16.msra.mxu2 %v4267_v20  ;;  %v2526_v2 = vpop.f32.mrf.mxu1 }
 0x127   :  { %2831 = vmatpush.bf16.msra.mxu3 %v4275_v21  ;;  %v2499_v20 = vadd.f32 %v2498_v62, %v2485_v0 }
 0x129   :  { %2790 = vmatpush.bf16.msra.mxu0 %v4250_v22  ;;  %2804 = vmatpush.bf16.msra.mxu1 %v4258_v23  ;;  %v2540_v4 = vpop.f32.mrf.mxu2  ;;  %v2568_v9 = vpop.f32.mrf.mxu0  ;;  %v2473_v23 = vadd.f32 %v2472_v61, %v2458_v60 }
 0x12a   :  { %2818 = vmatpush.bf16.msra.mxu2 %v4266_v25  ;;  %v2513_v25 = vadd.f32 %v2512_v1, %v2499_v20 }
 0x12b   :  { %2832 = vmatpush.bf16.msra.mxu3 %v4274_v16  ;;  %v2487_v31 = vadd.f32 %v2486_v63, %v2473_v23 }
 0x12c   :  { %2791 = vmatmul.bf16.vlgmr.msra.gmra.mxu0 %v3047_v34  ;;  %2805 = vmatmul.bf16.vlgmr.msra.gmra.mxu1 %v3051_v36  ;;  %v2527_v26 = vadd.f32 %v2526_v2, %v2513_v25 }
 0x12d   :  { %2839 = vmatpush.bf16.msrb.mxu0 %v4289_v13  ;;  %2853 = vmatpush.bf16.msrb.mxu1 %v4297_v33  ;;  %v2556_v17 = vpop.f32.mrf.mxu3  ;;  %v2501_v32 = vadd.f32 %v2500_v3, %v2487_v31 }
 0x12e   :  { %2819 = vmatmul.bf16.vlgmr.msra.gmra.mxu2 %v3055_v37  ;;  %2833 = vmatmul.bf16.vlgmr.msra.gmra.mxu3 %v3059_v28  ;;  %v2528_v6 = vpop.f32.mrf.mxu1  ;;  %v2541_v33 = vadd.f32 %v2540_v4, %v2527_v26 }
 0x12f   :  { %v2515_v15 = vadd.f32 %v2514_v5, %v2501_v32 }
 0x130   :  { %v2555_v34 = vadd.f32 %v2554_v7, %v2541_v33 }
 0x131   :  { %2840 = vmatpush.bf16.msrb.mxu0 %v4288_v38  ;;  %2854 = vmatpush.bf16.msrb.mxu1 %v4296_v39  ;;  %v2542_v8 = vpop.f32.mrf.mxu2  ;;  %v2570_v19 = vpop.f32.mrf.mxu0  ;;  %v2529_v36 = vadd.f32 %v2528_v6, %v2515_v15 }
 0x132   :  { %v2569_v37 = vadd.f32 %v2568_v9, %v2555_v34 }
 0x133   :  { %v2543_v38 = vadd.f32 %v2542_v8, %v2529_v36 }
 0x135   :  { %2841 = vmatpush.bf16.msrb.mxu0 %v4287_v27  ;;  %2855 = vmatpush.bf16.msrb.mxu1 %v4295_v40  ;;  %v2610_v29 = vpop.f32.mrf.mxu3  ;;  %v2557_v40 = vadd.f32 %v2556_v17, %v2543_v38 }
 0x136   :  { %v2582_v10 = vpop.f32.mrf.mxu1 }
 0x137   :  { %v2583_v28 = vadd.f32 %v2582_v10, %v2569_v37 }
 0x139   :  { %2842 = vmatpush.bf16.msrb.mxu0 %v4286_v41  ;;  %2856 = vmatpush.bf16.msrb.mxu1 %v4294_v42  ;;  %v2596_v18 = vpop.f32.mrf.mxu2 }
 0x13a   :  { %v2597_v41 = vadd.f32 %v2596_v18, %v2583_v28 }
 0x13d   :  { %2843 = vmatpush.bf16.msrb.mxu0 %v4285_v43  ;;  %2857 = vmatpush.bf16.msrb.mxu1 %v4293_v44  ;;  %v2612_v13 = vpop.f32.mrf.mxu3  ;;  %v2571_v43 = vadd.f32 %v2570_v19, %v2557_v40 }
 0x13e   :  { %v2584_v11 = vpop.f32.mrf.mxu1 }
 0x141   :  { %2844 = vmatpush.bf16.msrb.mxu0 %v4284_v45  ;;  %2858 = vmatpush.bf16.msrb.mxu1 %v4292_v46  ;;  %v2598_v21 = vpop.f32.mrf.mxu2  ;;  %v2611_v45 = vadd.f32 %v2610_v29, %v2597_v41  ;;  %v2585_v46 = vadd.f32 %v2584_v11, %v2571_v43 }
 0x145   :  { %2845 = vmatpush.bf16.msrb.mxu0 %v4283_v47  ;;  %2859 = vmatpush.bf16.msrb.mxu1 %v4291_v48 }
 0x149   :  { %2846 = vmatpush.bf16.msrb.mxu0 %v4282_v49  ;;  %2860 = vmatpush.bf16.msrb.mxu1 %v4290_v50  ;;  %v2624_v22 = vpop.f32.mrf.mxu0  ;;  %v2638_v30 = vpop.f32.mrf.mxu1  ;;  %v2599_v49 = vadd.f32 %v2598_v21, %v2585_v46 }
 0x14a   :  { %v2625_v47 = vadd.f32 %v2624_v22, %v2611_v45 }
 0x14b   :  { %v2613_v54 = vadd.f32 %v2612_v13, %v2599_v49 }
 0x14c   :  { %2847 = vmatmul.bf16.vlgmr.msrb.gmra.mxu0 %v3063_v58  ;;  %2861 = vmatmul.bf16.vlgmr.msrb.gmra.mxu1 %v3067_v57  ;;  %v2639_v51 = vadd.f32 %v2638_v30, %v2625_v47 }
 0x151   :  { %v2626_v16 = vpop.f32.mrf.mxu0  ;;  %v2640_v35 = vpop.f32.mrf.mxu1 }
 0x152   :  { %v2652_v14 = vpop.f32.mrf.mxu2  ;;  %v2666_v24 = vpop.f32.mrf.mxu3  ;;  %v2627_v56 = vadd.f32 %v2626_v16, %v2613_v54 }
 0x153   :  { %v2653_v55 = vadd.f32 %v2652_v14, %v2639_v51 }
 0x154   :  { %v2641_v60 = vadd.f32 %v2640_v35, %v2627_v56 }
 0x155   :  { %v2667_v57 = vadd.f32 %v2666_v24, %v2653_v55 }
 0x15a   :  { %v2654_v39 = vpop.f32.mrf.mxu2  ;;  %v2668_v44 = vpop.f32.mrf.mxu3 }
 0x15b   :  { %v2655_v63 = vadd.f32 %v2654_v39, %v2641_v60 }
 0x15d   :  { %v2669_v3 = vadd.f32 %v2668_v44, %v2655_v63 }
 0x169   :  { %v2680_v27 = vpop.f32.mrf.mxu0  ;;  %v2694_v42 = vpop.f32.mrf.mxu1 }
 0x16a   :  { %v2681_v61 = vadd.f32 %v2680_v27, %v2667_v57 }
 0x16c   :  { %v2695_v2 = vadd.f32 %v2694_v42, %v2681_v61 }
 0x171   :  { %v2682_v50 = vpop.f32.mrf.mxu0  ;;  %v2696_v52 = vpop.f32.mrf.mxu1 }
 0x172   :  { %v2708_v48 = vpop.f32.mrf.mxu2  ;;  %v2722_v53 = vpop.f32.mrf.mxu3  ;;  %v2683_v6 = vadd.f32 %v2682_v50, %v2669_v3 }
 0x173   :  { %v2709_v4 = vadd.f32 %v2708_v48, %v2695_v2 }
 0x174   :  { %v2697_v17 = vadd.f32 %v2696_v52, %v2683_v6 }
 0x175   :  { %v2723_v8 = vadd.f32 %v2722_v53, %v2709_v4 }
 0x17a   :  { %v2710_v58 = vpop.f32.mrf.mxu2  ;;  %v2724_v1 = vpop.f32.mrf.mxu3 }
 0x17b   :  { %v2711_v19 = vadd.f32 %v2710_v58, %v2697_v17 }
 0x17d   :  { %v2725_v0 = vadd.f32 %v2724_v1, %v2711_v19 }
 0x189   :  { %v2736_v59 = vpop.f32.mrf.mxu0  ;;  %v2750_v62 = vpop.f32.mrf.mxu1 }
 0x18a   :  { %v2737_v18 = vadd.f32 %v2736_v59, %v2723_v8 }
 0x18c   :  { %v2751_v12 = vadd.f32 %v2750_v62, %v2737_v18 }
 0x191   :  { %v2738_v7 = vpop.f32.mrf.mxu0  ;;  %v2752_v9 = vpop.f32.mrf.mxu1 }
 0x192   :  { %v2764_v5 = vpop.f32.mrf.mxu2  ;;  %v2778_v10 = vpop.f32.mrf.mxu3  ;;  %v2739_v22 = vadd.f32 %v2738_v7, %v2725_v0 }
 0x193   :  { %v2765_v20 = vadd.f32 %v2764_v5, %v2751_v12 }
 0x194   :  { %v2753_v30 = vadd.f32 %v2752_v9, %v2739_v22 }
 0x195   :  { %v2779_v25 = vadd.f32 %v2778_v10, %v2765_v20 }
 0x19a   :  { %v2766_v11 = vpop.f32.mrf.mxu2  ;;  %v2780_v23 = vpop.f32.mrf.mxu3 }
 0x19b   :  { %v2767_v26 = vadd.f32 %v2766_v11, %v2753_v30 }
 0x19d   :  { %v2781_v16 = vadd.f32 %v2780_v23, %v2767_v26 }
 0x1a9   :  { %v2792_v29 = vpop.f32.mrf.mxu0  ;;  %v2806_v21 = vpop.f32.mrf.mxu1 }
 0x1aa   :  { %v2793_v31 = vadd.f32 %v2792_v29, %v2779_v25 }
 0x1ac   :  { %v2807_v33 = vadd.f32 %v2806_v21, %v2793_v31 }
 0x1b1   :  { %v2820_v13 = vpop.f32.mrf.mxu2  ;;  %v2794_v32 = vpop.f32.mrf.mxu0 }
 0x1b2   :  { %v2808_v14 = vpop.f32.mrf.mxu1  ;;  %v2834_v15 = vpop.f32.mrf.mxu3  ;;  %v2821_v34 = vadd.f32 %v2820_v13, %v2807_v33  ;;  %v2795_v35 = vadd.f32 %v2794_v32, %v2781_v16 }
 0x1b4   :  { %v2835_v24 = vadd.f32 %v2834_v15, %v2821_v34  ;;  %v2809_v38 = vadd.f32 %v2808_v14, %v2795_v35 }
 0x1b9   :  { %v2822_v36 = vpop.f32.mrf.mxu2 }
 0x1ba   :  { %v2823_v27 = vadd.f32 %v2822_v36, %v2809_v38  ;;  %v2836_v41 = vpop.f32.mrf.mxu3 }
 0x1bc   :  { %v2837_v42 = vadd.f32 %v2836_v41, %v2823_v27 }
 0x1c9   :  { %v2848_v37 = vpop.f32.mrf.mxu0  ;;  %v2862_v39 = vpop.f32.mrf.mxu1 }
 0x1ca   :  { %v2849_v28 = vadd.f32 %v2848_v37, %v2835_v24 }
 0x1cc   :  { %v2863_v40 = vadd.f32 %v2862_v39, %v2849_v28 }
 0x1ce   :  { %2868 = vst.msk [vmem:[#allocation3] sm:$0xff] %vm2867_vm12, %v2863_v40 }
 0x1d1   :  { %v2850_v43 = vpop.f32.mrf.mxu0  ;;  %v2864_v45 = vpop.f32.mrf.mxu1 }
 0x1d2   :  { %v2851_v44 = vadd.f32 %v2850_v43, %v2837_v42 }
 0x1d4   :  { %v2865_v46 = vadd.f32 %v2864_v45, %v2851_v44 }
 0x1d6   :  { %2869 = vst.msk [vmem:[#allocation3 + $0x8] sm:$0xff] %vm2867_vm12, %v2865_v46 }
 0x1d7   :  { %2882 = dma.vmem_to_hbm [thread:$0]  %s2875_s29, 256, %s2877_s4, [#allocation4], %s4368_s5, %s4368_s5, %s4369_s6  }
 0x1d8   :  { %4354 = dma.done.wait [#allocation4], 256  }
 0x1d9   :  { %4355 = vsyncadd [#allocation4], 4294967040 }
 0x1da   :  { %2887 = vsyncpa [#allocation4], 1 }

</bundles_post_ra>
